<compile_context>
chip_gen: v6e
topology: v6e:2x2x1
jax: 0.10.0
libtpu: 0.0.40
codegen_flags: <defaults>
</compile_context>

<pallas_src>
import jax
import jax.numpy as jnp
from jax.experimental import pallas as pl
from jax.experimental.pallas import tpu as pltpu

LAYER_DIMS = [26, 32, 64, 32, 16, 8, 1]
_LANE = 128        # TPU lane width; layer-5 output / w6 row are padded to this
_VEC_ROWS = 8      # one (8,128) f32 VMEM tile holds all biases + w6 row + b6


def ednet_kernel(x_ref, w1, w2, w3, w4, w5, vec_ref, o_ref):
    """Fused 6-layer MLP for one batch tile of T rows.

    x_ref   : (T, 26)  f32   activations, batch on sublanes
    w1..w5  : (in,out) bf16  MXU weights (w5 zero-padded to (16, 128))
    vec_ref : (8, 128) f32   rows 0..4: biases b1..b5, row 5: w6 row, row 6[0]: b6
    o_ref   : (1, 1, T) f32  lane-dense output row for this tile
    """
    vecs = vec_ref[...]                                    # (8, 128) f32

    def dense_relu(h, w_ref, bias_row):
        # bf16 operands on the MXU, f32 accumulation; bias + ReLU in f32 on the VPU.
        acc = jnp.dot(h.astype(jnp.bfloat16), w_ref[...],
                      preferred_element_type=jnp.float32)
        return jnp.maximum(acc + bias_row, 0.0)

    h = x_ref[...]                                         # (T, 26)  f32
    h = dense_relu(h, w1, vecs[0:1, :32])                  # (T, 32)
    h = dense_relu(h, w2, vecs[1:2, :64])                  # (T, 64)
    h = dense_relu(h, w3, vecs[2:3, :32])                  # (T, 32)
    h = dense_relu(h, w4, vecs[3:4, :16])                  # (T, 16)
    h = dense_relu(h, w5, vecs[4:5, :])                    # (T, 128), cols 8.. are 0

    # Final 8 -> 1 layer without an MXU pass: multiply by the padded w6 row
    # (VPU), transpose the (T,128) product (aligned XLU transpose) and reduce
    # over sublanes -> lane-dense (1, T) row.
    prod = h * vecs[5:6, :]                                # (T, 128) f32
    row = jnp.sum(prod.T, axis=0, keepdims=True)           # (1, T)   f32
    o_ref[0] = row + vecs[6:7, 0:1]                        # + b6 (broadcast scalar)


def _round_up(x, m):
    return (x + m - 1) // m * m


def prepare_params(params):
    """params: 6 pairs (W(in,out) f32, b(out,) f32) -> (bf16 weights, f32 vec slab)."""
    weights = []
    for i in range(5):
        w, _ = params[i]
        if i == 4:  # pad the (16, 8) layer-5 weight to (16, 128) so h5 is lane-full
            w = jnp.pad(w, ((0, 0), (0, _LANE - w.shape[1])))
        weights.append(w.astype(jnp.bfloat16))

    vec = jnp.zeros((_VEC_ROWS, _LANE), jnp.float32)
    for i in range(5):
        b = params[i][1].reshape(-1)
        vec = vec.at[i, : b.shape[0]].set(b)
    w6, b6 = params[5]
    vec = vec.at[5, : w6.shape[0]].set(w6.reshape(-1))     # w6 row (8 values)
    vec = vec.at[6, 0].set(b6.reshape(-1)[0])              # b6 scalar
    return weights, vec


def ednet_forward(x, params, *, batch_tile=256):
    """x: (B, 26) f32 -> (B, 1) f32.

    batch_tile must be a multiple of 128 (sweep 256-1024 at large B).
    On v7x keep B >= 2 * batch_tile so the 'parallel' grid spans both TensorCores.
    """
    B, F = x.shape
    assert F == LAYER_DIMS[0]
    assert batch_tile % 128 == 0

    tile = min(batch_tile, _round_up(B, 128))
    b_pad = _round_up(B, tile)
    grid_n = b_pad // tile
    if b_pad != B:
        x = jnp.pad(x, ((0, b_pad - B), (0, 0)))

    weights, vec = prepare_params(params)

    w_specs = [pl.BlockSpec(w.shape, lambda i: (0, 0)) for w in weights]
    vec_spec = pl.BlockSpec(vec.shape, lambda i: (0, 0))

    out = pl.pallas_call(
        ednet_kernel,
        out_shape=jax.ShapeDtypeStruct((grid_n, 1, tile), jnp.float32),
        grid=(grid_n,),
        in_specs=[pl.BlockSpec((tile, F), lambda i: (i, 0))] + w_specs + [vec_spec],
        out_specs=pl.BlockSpec((1, 1, tile), lambda i: (i, 0, 0)),
        compiler_params=pltpu.CompilerParams(
            dimension_semantics=("parallel",)),
    )(x, *weights, vec)

    return out.reshape(b_pad, 1)[:B]


def init_params(key):
    """PyTorch nn.Linear default init: uniform(+-1/sqrt(fan_in)) for W and b."""
    params = []
    for i in range(len(LAYER_DIMS) - 1):
        fan_in, fan_out = LAYER_DIMS[i], LAYER_DIMS[i + 1]
        key, kw, kb = jax.random.split(key, 3)
        bound = 1.0 / jnp.sqrt(jnp.float32(fan_in))
        w = jax.random.uniform(kw, (fan_in, fan_out), jnp.float32, -bound, bound)
        b = jax.random.uniform(kb, (fan_out,), jnp.float32, -bound, bound)
        params.append((w, b))
    return params


def ednet_reference(x, params, *, emulate_bf16=True):
    """Plain-JAX reference; optionally emulates the kernel's bf16 MXU operands."""
    h = x
    for i, (w, b) in enumerate(params):
        if emulate_bf16 and i < 5:
            w = w.astype(jnp.bfloat16).astype(jnp.float32)
            h = h.astype(jnp.bfloat16).astype(jnp.float32)
        h = h @ w + b
        if i < len(params) - 1:
            h = jnp.maximum(h, 0.0)
    return h


if __name__ == "__main__":
    key = jax.random.PRNGKey(0)
    kx, kp = jax.random.split(key)

    # 500 rows pads to 512 -> two 256-row grid steps (>= 2 for v7x's two TCs)
    # and exercises the pad-and-slice path.
    B = 500
    x = jax.random.normal(kx, (B, LAYER_DIMS[0]), dtype=jnp.float32)
    params = init_params(kp)

    out = ednet_forward(x, params, batch_tile=256)
    out = jax.block_until_ready(out)
    assert out.shape == (B, 1)

    ref = ednet_reference(x, params, emulate_bf16=True)
    assert jnp.allclose(out, ref, atol=2e-3, rtol=2e-3), \
        float(jnp.max(jnp.abs(out - ref)))

    print("KERNEL_OK")
</pallas_src>

<mosaic_0001>
module attributes {stable_mosaic.version = 11 : i64} {
  func.func @ednet_kernel(%arg0: i32, %arg1: memref<256x26xf32, #tpu.memory_space<vmem>>, %arg2: memref<26x32xbf16, #tpu.memory_space<vmem>>, %arg3: memref<32x64xbf16, #tpu.memory_space<vmem>>, %arg4: memref<64x32xbf16, #tpu.memory_space<vmem>>, %arg5: memref<32x16xbf16, #tpu.memory_space<vmem>>, %arg6: memref<16x128xbf16, #tpu.memory_space<vmem>>, %arg7: memref<8x128xf32, #tpu.memory_space<vmem>>, %arg8: memref<1x1x256xf32, #tpu.memory_space<vmem>>) attributes {dimension_semantics = [#tpu.dimension_semantics<parallel>], iteration_bounds = array<i64: 2>, scalar_prefetch = 0 : i64, scratch_operands = 0 : i64, tpu.core_type = #tpu.core_type<tc>, window_params = [{transform_indices = @transform_0, window_bounds = array<i64: 256, 26>}, {pipeline_mode = #tpu.pipeline_mode<synchronous>, transform_indices = @transform_1, window_bounds = array<i64: 26, 32>}, {pipeline_mode = #tpu.pipeline_mode<synchronous>, transform_indices = @transform_2, window_bounds = array<i64: 32, 64>}, {pipeline_mode = #tpu.pipeline_mode<synchronous>, transform_indices = @transform_3, window_bounds = array<i64: 64, 32>}, {pipeline_mode = #tpu.pipeline_mode<synchronous>, transform_indices = @transform_4, window_bounds = array<i64: 32, 16>}, {pipeline_mode = #tpu.pipeline_mode<synchronous>, transform_indices = @transform_5, window_bounds = array<i64: 16, 128>}, {pipeline_mode = #tpu.pipeline_mode<synchronous>, transform_indices = @transform_6, window_bounds = array<i64: 8, 128>}, {transform_indices = @transform_7, window_bounds = array<i64: 1, 1, 256>}]} {
    %c0 = arith.constant 0 : index
    %c0_0 = arith.constant 0 : index
    %0 = vector.load %arg7[%c0, %c0_0] : memref<8x128xf32, #tpu.memory_space<vmem>>, vector<8x128xf32>
    %c0_1 = arith.constant 0 : index
    %c0_2 = arith.constant 0 : index
    %1 = vector.load %arg1[%c0_1, %c0_2] : memref<256x26xf32, #tpu.memory_space<vmem>>, vector<256x26xf32>
    %2 = vector.extract_strided_slice %0 {offsets = [0, 0], sizes = [1, 32], strides = [1, 1]} : vector<8x128xf32> to vector<1x32xf32>
    %3 = arith.truncf %1 : vector<256x26xf32> to vector<256x26xbf16>
    %c0_3 = arith.constant 0 : index
    %c0_4 = arith.constant 0 : index
    %4 = vector.load %arg2[%c0_3, %c0_4] : memref<26x32xbf16, #tpu.memory_space<vmem>>, vector<26x32xbf16>
    %cst = arith.constant dense<0.000000e+00> : vector<256x32xf32>
    %5 = tpu.matmul %3, %4, %cst {dimension_numbers = #tpu.dot_dimension_numbers<[1], [0], [0], [1], [0, 0, 1, 1], [], []>} : vector<256x26xbf16>, vector<26x32xbf16>, vector<256x32xf32> -> vector<256x32xf32>
    %6 = vector.broadcast %2 : vector<1x32xf32> to vector<256x32xf32>
    %7 = arith.addf %5, %6 : vector<256x32xf32>
    %cst_5 = arith.constant 0.000000e+00 : f32
    %8 = vector.broadcast %cst_5 : f32 to vector<256x32xf32>
    %9 = arith.maximumf %7, %8 : vector<256x32xf32>
    %10 = vector.extract_strided_slice %0 {offsets = [1, 0], sizes = [1, 64], strides = [1, 1]} : vector<8x128xf32> to vector<1x64xf32>
    %11 = arith.truncf %9 : vector<256x32xf32> to vector<256x32xbf16>
    %c0_6 = arith.constant 0 : index
    %c0_7 = arith.constant 0 : index
    %12 = vector.load %arg3[%c0_6, %c0_7] : memref<32x64xbf16, #tpu.memory_space<vmem>>, vector<32x64xbf16>
    %cst_8 = arith.constant dense<0.000000e+00> : vector<256x64xf32>
    %13 = tpu.matmul %11, %12, %cst_8 {dimension_numbers = #tpu.dot_dimension_numbers<[1], [0], [0], [1], [0, 0, 1, 1], [], []>} : vector<256x32xbf16>, vector<32x64xbf16>, vector<256x64xf32> -> vector<256x64xf32>
    %14 = vector.broadcast %10 : vector<1x64xf32> to vector<256x64xf32>
    %15 = arith.addf %13, %14 : vector<256x64xf32>
    %cst_9 = arith.constant 0.000000e+00 : f32
    %16 = vector.broadcast %cst_9 : f32 to vector<256x64xf32>
    %17 = arith.maximumf %15, %16 : vector<256x64xf32>
    %18 = vector.extract_strided_slice %0 {offsets = [2, 0], sizes = [1, 32], strides = [1, 1]} : vector<8x128xf32> to vector<1x32xf32>
    %19 = arith.truncf %17 : vector<256x64xf32> to vector<256x64xbf16>
    %c0_10 = arith.constant 0 : index
    %c0_11 = arith.constant 0 : index
    %20 = vector.load %arg4[%c0_10, %c0_11] : memref<64x32xbf16, #tpu.memory_space<vmem>>, vector<64x32xbf16>
    %cst_12 = arith.constant dense<0.000000e+00> : vector<256x32xf32>
    %21 = tpu.matmul %19, %20, %cst_12 {dimension_numbers = #tpu.dot_dimension_numbers<[1], [0], [0], [1], [0, 0, 1, 1], [], []>} : vector<256x64xbf16>, vector<64x32xbf16>, vector<256x32xf32> -> vector<256x32xf32>
    %22 = vector.broadcast %18 : vector<1x32xf32> to vector<256x32xf32>
    %23 = arith.addf %21, %22 : vector<256x32xf32>
    %cst_13 = arith.constant 0.000000e+00 : f32
    %24 = vector.broadcast %cst_13 : f32 to vector<256x32xf32>
    %25 = arith.maximumf %23, %24 : vector<256x32xf32>
    %26 = vector.extract_strided_slice %0 {offsets = [3, 0], sizes = [1, 16], strides = [1, 1]} : vector<8x128xf32> to vector<1x16xf32>
    %27 = arith.truncf %25 : vector<256x32xf32> to vector<256x32xbf16>
    %c0_14 = arith.constant 0 : index
    %c0_15 = arith.constant 0 : index
    %28 = vector.load %arg5[%c0_14, %c0_15] : memref<32x16xbf16, #tpu.memory_space<vmem>>, vector<32x16xbf16>
    %cst_16 = arith.constant dense<0.000000e+00> : vector<256x16xf32>
    %29 = tpu.matmul %27, %28, %cst_16 {dimension_numbers = #tpu.dot_dimension_numbers<[1], [0], [0], [1], [0, 0, 1, 1], [], []>} : vector<256x32xbf16>, vector<32x16xbf16>, vector<256x16xf32> -> vector<256x16xf32>
    %30 = vector.broadcast %26 : vector<1x16xf32> to vector<256x16xf32>
    %31 = arith.addf %29, %30 : vector<256x16xf32>
    %cst_17 = arith.constant 0.000000e+00 : f32
    %32 = vector.broadcast %cst_17 : f32 to vector<256x16xf32>
    %33 = arith.maximumf %31, %32 : vector<256x16xf32>
    %34 = vector.extract_strided_slice %0 {offsets = [4, 0], sizes = [1, 128], strides = [1, 1]} : vector<8x128xf32> to vector<1x128xf32>
    %35 = arith.truncf %33 : vector<256x16xf32> to vector<256x16xbf16>
    %c0_18 = arith.constant 0 : index
    %c0_19 = arith.constant 0 : index
    %36 = vector.load %arg6[%c0_18, %c0_19] : memref<16x128xbf16, #tpu.memory_space<vmem>>, vector<16x128xbf16>
    %cst_20 = arith.constant dense<0.000000e+00> : vector<256x128xf32>
    %37 = tpu.matmul %35, %36, %cst_20 {dimension_numbers = #tpu.dot_dimension_numbers<[1], [0], [0], [1], [0, 0, 1, 1], [], []>} : vector<256x16xbf16>, vector<16x128xbf16>, vector<256x128xf32> -> vector<256x128xf32>
    %38 = vector.broadcast %34 : vector<1x128xf32> to vector<256x128xf32>
    %39 = arith.addf %37, %38 : vector<256x128xf32>
    %cst_21 = arith.constant 0.000000e+00 : f32
    %40 = vector.broadcast %cst_21 : f32 to vector<256x128xf32>
    %41 = arith.maximumf %39, %40 : vector<256x128xf32>
    %42 = vector.extract_strided_slice %0 {offsets = [5, 0], sizes = [1, 128], strides = [1, 1]} : vector<8x128xf32> to vector<1x128xf32>
    %43 = vector.broadcast %42 : vector<1x128xf32> to vector<256x128xf32>
    %44 = arith.mulf %41, %43 : vector<256x128xf32>
    %45 = tpu.transpose %44, [1, 0] : vector<256x128xf32> -> vector<128x256xf32>
    %cst_22 = arith.constant dense<0.000000e+00> : vector<256xf32>
    %46 = vector.multi_reduction <add>, %45, %cst_22 [0] : vector<128x256xf32> to vector<256xf32>
    %47 = vector.shape_cast %46 : vector<256xf32> to vector<1x256xf32>
    %48 = vector.extract_strided_slice %0 {offsets = [6, 0], sizes = [1, 1], strides = [1, 1]} : vector<8x128xf32> to vector<1x1xf32>
    %49 = vector.broadcast %48 : vector<1x1xf32> to vector<1x256xf32>
    %50 = arith.addf %47, %49 : vector<1x256xf32>
    %c0_23 = arith.constant 0 : index
    %c0_24 = arith.constant 0 : index
    %c0_25 = arith.constant 0 : index
    %51 = vector.load %arg8[%c0_23, %c0_24, %c0_25] : memref<1x1x256xf32, #tpu.memory_space<vmem>>, vector<1x1x256xf32>
    %52 = vector.shape_cast %51 : vector<1x1x256xf32> to vector<1x256xf32>
    %53 = vector.shape_cast %50 : vector<1x256xf32> to vector<1x1x256xf32>
    tpu.vector_store %arg8[%c0_23, %c0_24, %c0_25], %53 {strides = array<i32>} : memref<1x1x256xf32, #tpu.memory_space<vmem>>, vector<1x1x256xf32>,
    return
  }
  func.func @transform_0(%arg0: i32) -> (i32, i32) {
    %c0_i32 = arith.constant 0 : i32
    %c0_i32_0 = arith.constant 0 : i32
    return %arg0, %c0_i32 : i32, i32
  }
  func.func @transform_1(%arg0: i32) -> (i32, i32) {
    %c0_i32 = arith.constant 0 : i32
    %c0_i32_0 = arith.constant 0 : i32
    %c0_i32_1 = arith.constant 0 : i32
    return %c0_i32, %c0_i32_0 : i32, i32
  }
  func.func @transform_2(%arg0: i32) -> (i32, i32) {
    %c0_i32 = arith.constant 0 : i32
    %c0_i32_0 = arith.constant 0 : i32
    %c0_i32_1 = arith.constant 0 : i32
    return %c0_i32, %c0_i32_0 : i32, i32
  }
  func.func @transform_3(%arg0: i32) -> (i32, i32) {
    %c0_i32 = arith.constant 0 : i32
    %c0_i32_0 = arith.constant 0 : i32
    %c0_i32_1 = arith.constant 0 : i32
    return %c0_i32, %c0_i32_0 : i32, i32
  }
  func.func @transform_4(%arg0: i32) -> (i32, i32) {
    %c0_i32 = arith.constant 0 : i32
    %c0_i32_0 = arith.constant 0 : i32
    %c0_i32_1 = arith.constant 0 : i32
    return %c0_i32, %c0_i32_0 : i32, i32
  }
  func.func @transform_5(%arg0: i32) -> (i32, i32) {
    %c0_i32 = arith.constant 0 : i32
    %c0_i32_0 = arith.constant 0 : i32
    %c0_i32_1 = arith.constant 0 : i32
    return %c0_i32, %c0_i32_0 : i32, i32
  }
  func.func @transform_6(%arg0: i32) -> (i32, i32) {
    %c0_i32 = arith.constant 0 : i32
    %c0_i32_0 = arith.constant 0 : i32
    %c0_i32_1 = arith.constant 0 : i32
    return %c0_i32, %c0_i32_0 : i32, i32
  }
  func.func @transform_7(%arg0: i32) -> (i32, i32, i32) {
    %c0_i32 = arith.constant 0 : i32
    %c0_i32_0 = arith.constant 0 : i32
    %c0_i32_1 = arith.constant 0 : i32
    return %arg0, %c0_i32, %c0_i32_0 : i32, i32, i32
  }
}

</mosaic_0001>

<bundles_post_ra>
// kernel: tpu_custom_call.1
= control target key start
LH: loop header
LB: loop body
LE: loop exit
PB: predicated region body
PF: predicated region fallthrough
CT: control target
= control target key end

     0   :  { %12 = vsyncpa [#allocation3], 0  ;;  %s2985_s0 = inlined_call_operand.vmem [shape: f32[512,26], index: 0, kind: input, shape index: {}]   ;;  %s2986_s1 = inlined_call_operand.vmem [shape: bf16[26,32], index: 1, kind: input, shape index: {}]   ;;  %s2987_s2 = inlined_call_operand.vmem [shape: bf16[32,64], index: 2, kind: input, shape index: {}]   ;;  %s2988_s3 = inlined_call_operand.vmem [shape: bf16[64,32], index: 3, kind: input, shape index: {}]   ;;  %s2989_s4 = inlined_call_operand.vmem [shape: bf16[32,16], index: 4, kind: input, shape index: {}]   ;;  %s2990_s5 = inlined_call_operand.vmem [shape: bf16[16,128], index: 5, kind: input, shape index: {}]   ;;  %s2991_s6 = inlined_call_operand.vmem [shape: f32[8,128], index: 6, kind: input, shape index: {}]   ;;  %s2992_s7 = inlined_call_operand.hbm [shape: f32[2,1,256], index: 7, kind: output, shape index: {}]  }
   0x1   :  { %14 = vsyncpa [#allocation3 + $0x1], 0  ;;  %s2502_s24 = smov 0   ;;  %s2504_s25 = smov 0  }
   0x2   :  { %s2506_s26 = smov 0   ;;  %s2508_s27 = smov 0  }
   0x3 LB: > { %s1959_s28 = sadd.s32 4294967295, %s2457_s27   ;;  %s1960_s29 = sadd.s32 4294967294, %s2457_s27   ;;  %s2457_s27 = sphi %s2508_s27, %s2998_s27   ;;  %s2453_s26 = sphi %s2506_s26, %s2997_s26   ;;  %s2449_s25 = sphi %s2504_s25, %s2996_s25   ;;  %s2445_s24 = sphi %s2502_s24, %s2995_s24  }
   0x4   : > { %s2525_s30 = sadd.s32 1, %s2457_s27   ;;  %s179_s8 = sadd.s32 1, %s2453_s26 }
   0x5   : > { %s176_s9 = ssub.s32 %s2457_s27, %s2525_s30  ;;  %p189_p0 = scmp.ne.s32.totalorder %s2453_s26, %s2449_s25 }
   0x6   : > { %p177_p1 = scmp.eq.s32.totalorder %s176_s9, 0  ;;  %p190_p2 = scmp.eq.s32.totalorder %s1959_s28, 1 }
   0x7   : > { %p195_p3 = scmp.ne.s32.totalorder %s2449_s25, %s2445_s24  ;;  %p196_p4 = scmp.eq.s32.totalorder %s1960_s29, 1 }
   0x8   : > { %s2535_s10 = scalar_select %p177_p1, %s2453_s26, %s179_s8  }
   0x9   : > { %p2537_p5 = por %p190_p2, %p189_p0  ;;  %p2541_p6 = por %p196_p4, %p195_p3 }
   0xa   : > { %p1963_p7 = scmp.ge.s32.totalorder %s2457_s27, 1  ;;  %p241_p8 = scmp.lt.s32.totalorder %s2457_s27, 3 }
   0xc   : > { %p242_p9 = pnand %p1963_p7, %p241_p8 }
   0xd   : > { %s2553_s17 = sshll.u32 (!%p242_p9), %s1959_s28, 5  ;;  %s270_s16 = sand.u32 (!%p242_p9), 1, %s2449_s25  }
   0xe   : > { %245 = sbr.rel (%p242_p9) target bundleno = 1307 (0x51b), region = 48  ;;  %p274_p10 = scmp.lt.s32.totalorder (!%p242_p9), %s2553_s17, 63 }
   0xf   : > { %s1964_s18 = sshll.u32 (!%p242_p9), %s270_s16, 1  ;;  %s1899_s23 = scalar_lea.hbm (!%p242_p9), %s2992_s7, %s2553_s17 }
  0x10   : > { %s272_s19 = scalar_lea.vmem (!%p242_p9), [#allocation2], %s1964_s18  ;;  %s2461_s8 = smov (!%p242_p9), [#allocation2]  }
  0x11   : > { %s2401_s9 = sshll.u32 (!%p242_p9), %s2461_s8, 4  ;;  %s2402_s9 = int_to_ptr.vmem [resolvable:$false] %s2401_s9 }
  0x12   : > { %s2403_s13 = scalar_lea.vmem (!%p242_p9), %s2402_s9, 64 }
  0x13   : > { %v2385_v0 = vld [vmem:[%s2986_s1 + $0x8] sm:$0x1f]   ;;  %vm397_vm0 = vcmask 1044480   ;;  %v2386_v1 = vld [vmem:[%s2986_s1] sm:$0xff]   ;;  %s275_s20 = scalar_select %p274_p10, %s2553_s17, 63  ;;  %vm348_vm1 = vcmask 211968   ;;  %v333_v56 = vlaneseq }
  0x14   : > { %2341 = vmatprep.subr.msk.bf16.mxu0 %vm397_vm0, %v2385_v0  ;;  %v399_v2 = vsel %vm397_vm0, %v2385_v0, 0  ;;  %2342 = vmatprep.subr.msk.bf16.mxu1 %vm397_vm0, %v2385_v0  ;;  %v2387_v3 = vld [vmem:[%s2987_s2 + $0x8] sm:$0xff]   ;;  %v2388_v25 = vld [vmem:[%s2987_s2] sm:$0xff]   ;;  %v2389_v53 = vld [vmem:[%s2988_s3 + $0x18] sm:$0xff]   ;;  %vm630_vm2 = vcmask 261120   ;;  %vm924_vm3 = vcmask 523264  }
  0x15   : > { %2156 = vmatpush3.bf16.msra.mxu0 %v399_v2  ;;  %2339 = vmatpush3.bf16.msra.mxu1 %v399_v2  ;;  %s1966_s21 = sshll.u32 %s275_s20, 3  ;;  %v2390_v54 = vld [vmem:[%s2988_s3 + $0x10] sm:$0xff]   ;;  %v2391_v55 = vld [vmem:[%s2988_s3 + $0x8] sm:$0xff]   ;;  %v2626_v57 = vshrl.u32 %v333_v56, 7  ;;  %v2632_v59 = vld [vmem:[%s2991_s6] sm:$0xff]  ;;  %vm1471_vm4 = vcmask 130048  }
  0x16   : > { %2157 = vmatprep.subr.bf16.mxu0 %v2386_v1  ;;  %2338 = vmatprep.subr.bf16.mxu1 %v2386_v1  ;;  %s2563_s28 = scalar_lea.vmem %s2985_s0, %s1966_s21  ;;  %s1901_s20 = sshll.u32 %s272_s19, 4  ;;  %vm1883_vm5 = vcmp.lt.s32.totalorder %v333_v56, 256  ;;  %s1902_s20 = int_to_ptr.vmem [resolvable:$true] %s1901_s20 }
  0x17   : > { %v281_v4 = vld [vmem:[%s2563_s28] sm:$0xff]  ;;  %v282_v5 = vld [vmem:[%s2563_s28 + $0x8] sm:$0xff]  ;;  %v283_v6 = vld [vmem:[%s2563_s28 + $0x10] sm:$0xff]  ;;  %v335_v58 = vsub.s32 0, %v2626_v57  ;;  %s2397_s29 = scalar_lea.vmem %s1902_s20, 32  ;;  %p2404_p0 = scmp.lt.s32.totalorder %s1902_s20, %s2402_s9 }
  0x18   : > { %v313_v7 = vpack.c.bf16 %v282_v5, %v281_v4  ;;  %v284_v8 = vld [vmem:[%s2563_s28 + $0x18] sm:$0xff]  ;;  %v285_v9 = vld [vmem:[%s2563_s28 + $0x20] sm:$0xff]  ;;  %v286_v10 = vld [vmem:[%s2563_s28 + $0x28] sm:$0xff]  ;;  %p2398_p11 = scmp.ne.s32.totalorder %s1902_s20, %s2397_s29  ;;  %p2405_p1 = scmp.lt.s32.totalorder %s2403_s13, %s2397_s29 }
  0x19   : > { %2158 = vmatpush3.bf16.msra.mxu0 %v2386_v1  ;;  %2340 = vmatpush3.bf16.msra.mxu1 %v2386_v1  ;;  %v314_v11 = vpack.c.bf16 %v284_v8, %v283_v6  ;;  %v315_v12 = vpack.c.bf16 %v286_v10, %v285_v9  ;;  %v287_v13 = vld [vmem:[%s2563_s28 + $0x30] sm:$0xff]  ;;  %v288_v14 = vld [vmem:[%s2563_s28 + $0x38] sm:$0xff]  ;;  %v289_v15 = vld [vmem:[%s2563_s28 + $0x40] sm:$0xff]  ;;  %v2635_v61 = vrot.slane %v2632_v59, %v335_v58 }
  0x1a   : > { %2191 = vmatprep.subr.bf16.mxu1 %v2387_v3  ;;  %2159 = vmatprep.mubr.msk.bf16.mxu0 %vm348_vm1, %v313_v7  ;;  %v290_v16 = vld [vmem:[%s2563_s28 + $0x48] sm:$0xff]  ;;  %v297_v17 = vld [vmem:[%s2563_s28 + $0x80] sm:$0xff]  ;;  %v299_v20 = vld [vmem:[%s2563_s28 + $0x90] sm:$0xff]  ;;  %v316_v26 = vpack.c.bf16 %v288_v14, %v287_v13  ;;  %p2399_p12 = pnand %p2398_p11, %p2537_p5  ;;  %p2406_p2 = por %p2405_p1, %p2404_p0 }
  0x1b   : > { %v298_v18 = vld [vmem:[%s2563_s28 + $0x88] sm:$0xff]  ;;  %v300_v21 = vld [vmem:[%s2563_s28 + $0x98] sm:$0xff]  ;;  %v301_v22 = vld [vmem:[%s2563_s28 + $0xa0] sm:$0xff]  ;;  %v317_v28 = vpack.c.bf16 %v290_v16, %v289_v15  ;;  %2227 = vmatprep.subr.bf16.mxu0 %v2389_v53 }
  0x1c   : > { %2160 = vmatmul.mubr.msk.bf16.vlgmr.msra.gmra.mxu0 %vm348_vm1, %v314_v11  ;;  %v321_v19 = vpack.c.bf16 %v298_v18, %v297_v17  ;;  %v322_v23 = vpack.c.bf16 %v300_v21, %v299_v20  ;;  %v302_v24 = vld [vmem:[%s2563_s28 + $0xa8] sm:$0xff]  ;;  %v303_v29 = vld [vmem:[%s2563_s28 + $0xb0] sm:$0xff]  ;;  %v304_v30 = vld [vmem:[%s2563_s28 + $0xb8] sm:$0xff]  ;;  %p2400_p13 = pneg %p2399_p12 }
  0x1d   : > { %2163 = vmatprep.mubr.msk.bf16.mxu0 %vm348_vm1, %v315_v12  ;;  %v323_v27 = vpack.c.bf16 %v302_v24, %v301_v22  ;;  %v305_v31 = vld [vmem:[%s2563_s28 + $0xc0] sm:$0xff]  ;;  %v306_v32 = vld [vmem:[%s2563_s28 + $0xc8] sm:$0xff]  ;;  %v291_v33 = vld [vmem:[%s2563_s28 + $0x50] sm:$0xff]  ;;  %v324_v35 = vpack.c.bf16 %v304_v30, %v303_v29  ;;  %2228 = vmatpush3.bf16.msra.mxu0 %v2389_v53 }
  0x1e   : > { %2175 = vmatprep.mubr.msk.bf16.mxu1 %vm348_vm1, %v321_v19  ;;  %v292_v34 = vld [vmem:[%s2563_s28 + $0x58] sm:$0xff]  ;;  %v293_v36 = vld [vmem:[%s2563_s28 + $0x60] sm:$0xff]  ;;  %v294_v37 = vld [vmem:[%s2563_s28 + $0x68] sm:$0xff]  ;;  %v325_v38 = vpack.c.bf16 %v306_v32, %v305_v31  ;;  %2229 = vmatprep.subr.bf16.mxu0 %v2390_v54  ;;  %p2407_p3 = pnand %p2406_p2, %p2400_p13 }
  0x1f   : > { %2176 = vmatmul.mubr.msk.bf16.vlgmr.msra.gmra.mxu1 %vm348_vm1, %v322_v23  ;;  %v318_v39 = vpack.c.bf16 %v292_v34, %v291_v33  ;;  %v319_v40 = vpack.c.bf16 %v294_v37, %v293_v36  ;;  %v307_v41 = vld [vmem:[%s2563_s28 + $0xd0] sm:$0xff]  ;;  %v308_v42 = vld [vmem:[%s2563_s28 + $0xd8] sm:$0xff]  ;;  %v309_v43 = vld [vmem:[%s2563_s28 + $0xe0] sm:$0xff] }
  0x20   : > { %2179 = vmatprep.mubr.msk.bf16.mxu1 %vm348_vm1, %v323_v27  ;;  %2192 = vmatpush3.bf16.msra.mxu1 %v2387_v3  ;;  %v310_v44 = vld [vmem:[%s2563_s28 + $0xe8] sm:$0xff]  ;;  %v295_v45 = vld [vmem:[%s2563_s28 + $0x70] sm:$0xff]  ;;  %v296_v46 = vld [vmem:[%s2563_s28 + $0x78] sm:$0xff]  ;;  %v326_v47 = vpack.c.bf16 %v308_v42, %v307_v41 }
  0x21   : > { %2193 = vmatprep.subr.bf16.mxu1 %v2388_v25  ;;  %v327_v48 = vpack.c.bf16 %v310_v44, %v309_v43  ;;  %v320_v49 = vpack.c.bf16 %v296_v46, %v295_v45  ;;  %v311_v50 = vld [vmem:[%s2563_s28 + $0xf0] sm:$0xff]  ;;  %v312_v51 = vld [vmem:[%s2563_s28 + $0xf8] sm:$0xff]  ;;  %2230 = vmatpush3.bf16.msra.mxu0 %v2390_v54  ;;  %s1887_s28 = scalar_lea.sflag [#allocation3], %s270_s16 }
  0x22   : > { %v328_v52 = vpack.c.bf16 %v312_v51, %v311_v50  ;;  %2231 = vmatprep.subr.bf16.mxu0 %v2391_v55 }
  0x24   : > { %2164 = vmatmul.mubr.msk.bf16.gmra.mxu0 %vm348_vm1, %v316_v26  ;;  %2194 = vmatpush3.bf16.msra.mxu1 %v2388_v25 }
  0x25   : > { %2167 = vmatprep.mubr.msk.bf16.mxu0 %vm348_vm1, %v317_v28  ;;  %2232 = vmatpush3.bf16.msra.mxu0 %v2391_v55 }
  0x27   : > { %2180 = vmatmul.mubr.msk.bf16.gmra.mxu1 %vm348_vm1, %v324_v35 }
  0x28   : > { %2183 = vmatprep.mubr.msk.bf16.mxu1 %vm348_vm1, %v325_v38 }
  0x2c   : > { %2168 = vmatmul.mubr.msk.bf16.gmra.mxu0 %vm348_vm1, %v318_v39 }
  0x2d   : > { %2171 = vmatprep.mubr.msk.bf16.mxu0 %vm348_vm1, %v319_v40 }
  0x2f   : > { %2184 = vmatmul.mubr.msk.bf16.gmra.mxu1 %vm348_vm1, %v326_v47 }
  0x30   : > { %2187 = vmatprep.mubr.msk.bf16.mxu1 %vm348_vm1, %v327_v48 }
  0x34   : > { %2172 = vmatmul.mubr.msk.bf16.gmra.mxu0 %vm348_vm1, %v320_v49 }
  0x37   : > { %2188 = vmatmul.mubr.msk.bf16.gmra.mxu1 %vm348_vm1, %v328_v52 }
  0xdc   : > { %v2161_v60 = vpop.f32.mrf.mxu0 }
  0xdd   : > { %v444_v3 = vadd.f32 %v2161_v60, %v2635_v61 }
  0xde   : > { %v435_v62 = vpop.f32.mrf.mxu0 }
  0xdf   : > { %v436_v0 = vadd.f32 %v435_v62, %v2635_v61  ;;  %v2639_v2 = vpop.f32.mrf.mxu1  ;;  %v564_v12 = vmax.f32 %v444_v3, 0.0 }
  0xe0   : > { %v2162_v63 = vpop.f32.mrf.mxu0 }
  0xe1   : > { %v447_v1 = vadd.f32 %v2162_v63, %v2635_v61  ;;  %v499_v6 = vpop.f32.mrf.mxu1  ;;  %v562_v9 = vmax.f32 %v436_v0, 0.0 }
  0xe2   : > { %v438_v4 = vpop.f32.mrf.mxu0  ;;  %v500_v50 = vadd.f32 %v499_v6, %v2635_v61 }
  0xe3   : > { %v439_v5 = vadd.f32 %v438_v4, %v2635_v61  ;;  %v565_v7 = vmax.f32 %v447_v1, 0.0  ;;  %v2643_v11 = vpop.f32.mrf.mxu1 }
  0xe4   : > { %v2165_v8 = vpop.f32.mrf.mxu0  ;;  %v578_v63 = vmax.f32 %v500_v50, 0.0  ;;  %v2394_v50 = vld [vmem:[%s2989_s4] sm:$0xff]  }
  0xe5   : > { %v563_v10 = vmax.f32 %v439_v5, 0.0  ;;  %v502_v15 = vpop.f32.mrf.mxu1  ;;  %v595_v16 = vpack.c.bf16 %v565_v7, %v564_v12  ;;  %v460_v21 = vadd.f32 %v2165_v8, %v2635_v61 }
  0xe6   : > { %v451_v13 = vpop.f32.mrf.mxu0  ;;  %v503_v51 = vadd.f32 %v502_v15, %v2635_v61  ;;  %v511_v15 = vadd.f32 %v2643_v11, %v2635_v61 }
  0xe7   : > { %v594_v14 = vpack.c.bf16 %v563_v10, %v562_v9  ;;  %v452_v18 = vadd.f32 %v451_v13, %v2635_v61  ;;  %v2648_v20 = vpop.f32.mrf.mxu1  ;;  %v568_v30 = vmax.f32 %v460_v21, 0.0  ;;  %v508_v13 = vadd.f32 %v2639_v2, %v2635_v61 }
  0xe8   : > { %v2166_v17 = vpop.f32.mrf.mxu0  ;;  %v579_v1 = vmax.f32 %v503_v51, 0.0  ;;  %v581_v21 = vmax.f32 %v511_v15, 0.0  ;;  %v616_v51 = vsub.s32 1, %v2626_v57 }
  0xe9   : > { %v463_v19 = vadd.f32 %v2166_v17, %v2635_v61  ;;  %2195 = vmatprep.mubr.msk.bf16.mxu1 %vm630_vm2, %v594_v14  ;;  %v515_v24 = vpop.f32.mrf.mxu1  ;;  %v566_v27 = vmax.f32 %v452_v18, 0.0 }
  0xea   : > { %v454_v22 = vpop.f32.mrf.mxu0  ;;  %2196 = vmatmul.mubr.msk.bf16.vlgmr.msra.gmra.mxu1 %vm630_vm2, %v595_v16  ;;  %v602_v9 = vpack.c.bf16 %v579_v1, %v578_v63  ;;  %v516_v10 = vadd.f32 %v515_v24, %v2635_v61 }
  0xeb   : > { %v455_v23 = vadd.f32 %v454_v22, %v2635_v61  ;;  %v569_v25 = vmax.f32 %v463_v19, 0.0  ;;  %v2182_v29 = vpop.f32.mrf.mxu1  ;;  %v580_v19 = vmax.f32 %v508_v13, 0.0 }
  0xec   : > { %v2169_v26 = vpop.f32.mrf.mxu0  ;;  %v582_v17 = vmax.f32 %v516_v10, 0.0  ;;  %v527_v2 = vadd.f32 %v2182_v29, %v2635_v61 }
  0xed   : > { %v567_v28 = vmax.f32 %v455_v23, 0.0  ;;  %v518_v33 = vpop.f32.mrf.mxu1  ;;  %v597_v34 = vpack.c.bf16 %v569_v25, %v568_v30  ;;  %v476_v39 = vadd.f32 %v2169_v26, %v2635_v61  ;;  %v524_v23 = vadd.f32 %v2648_v20, %v2635_v61 }
  0xee   : > { %v467_v31 = vpop.f32.mrf.mxu0  ;;  %v519_v12 = vadd.f32 %v518_v33, %v2635_v61  ;;  %v603_v26 = vpack.c.bf16 %v581_v21, %v580_v19  ;;  %v585_v30 = vmax.f32 %v527_v2, 0.0 }
  0xef   : > { %v596_v32 = vpack.c.bf16 %v567_v28, %v566_v27  ;;  %v468_v36 = vadd.f32 %v467_v31, %v2635_v61  ;;  %v2656_v38 = vpop.f32.mrf.mxu1  ;;  %v572_v47 = vmax.f32 %v476_v39, 0.0  ;;  %v584_v28 = vmax.f32 %v524_v23, 0.0 }
  0xf0   : > { %v2170_v35 = vpop.f32.mrf.mxu0  ;;  %v583_v18 = vmax.f32 %v519_v12, 0.0  ;;  %v540_v20 = vadd.f32 %v2656_v38, %v2635_v61 }
  0xf1   : > { %v479_v37 = vadd.f32 %v2170_v35, %v2635_v61  ;;  %2199 = vmatprep.mubr.msk.bf16.mxu1 %vm630_vm2, %v596_v32  ;;  %v531_v44 = vpop.f32.mrf.mxu1  ;;  %v570_v45 = vmax.f32 %v468_v36, 0.0 }
  0xf2   : > { %v470_v40 = vpop.f32.mrf.mxu0  ;;  %2200 = vmatmul.mubr.msk.bf16.gmra.mxu1 %vm630_vm2, %v597_v34  ;;  %v604_v24 = vpack.c.bf16 %v583_v18, %v582_v17  ;;  %v532_v11 = vadd.f32 %v531_v44, %v2635_v61  ;;  %v605_v34 = vpack.c.bf16 %v585_v30, %v584_v28  ;;  %v588_v39 = vmax.f32 %v540_v20, 0.0 }
  0xf3   : > { %v471_v41 = vadd.f32 %v470_v40, %v2635_v61  ;;  %v573_v42 = vmax.f32 %v479_v37, 0.0  ;;  %v2186_v54 = vpop.f32.mrf.mxu1 }
  0xf4   : > { %v2173_v43 = vpop.f32.mrf.mxu0  ;;  %v586_v31 = vmax.f32 %v532_v11, 0.0  ;;  %v543_v29 = vadd.f32 %v2186_v54, %v2635_v61 }
  0xf5   : > { %v571_v46 = vmax.f32 %v471_v41, 0.0  ;;  %v599_v52 = vpack.c.bf16 %v573_v42, %v572_v47  ;;  %v492_v60 = vadd.f32 %v2173_v43, %v2635_v61  ;;  %v534_v4 = vpop.f32.mrf.mxu1 }
  0xf6   : > { %v483_v48 = vpop.f32.mrf.mxu0  ;;  %v535_v25 = vadd.f32 %v534_v4, %v2635_v61  ;;  %v589_v40 = vmax.f32 %v543_v29, 0.0 }
  0xf7   : > { %v598_v49 = vpack.c.bf16 %v571_v46, %v570_v45  ;;  %v484_v55 = vadd.f32 %v483_v48, %v2635_v61  ;;  %v576_v7 = vmax.f32 %v492_v60, 0.0  ;;  %v2189_v16 = vpop.f32.mrf.mxu1 }
  0xf8   : > { %v2174_v53 = vpop.f32.mrf.mxu0  ;;  %v587_v32 = vmax.f32 %v535_v25, 0.0  ;;  %v607_v43 = vpack.c.bf16 %v589_v40, %v588_v39  ;;  %v556_v44 = vadd.f32 %v2189_v16, %v2635_v61 }
  0xf9   : > { %v495_v58 = vadd.f32 %v2174_v53, %v2635_v61  ;;  %2203 = vmatprep.mubr.msk.bf16.mxu1 %vm630_vm2, %v598_v49  ;;  %v574_v5 = vmax.f32 %v484_v55, 0.0  ;;  %v547_v22 = vpop.f32.mrf.mxu1  ;;  %v2392_v49 = vld [vmem:[%s2988_s3] sm:$0xff]   ;;  %v2708_v53 = vrot.slane %v2632_v59, %v616_v51 }
  0xfa   : > { %v486_v62 = vpop.f32.mrf.mxu0  ;;  %2204 = vmatmul.mubr.msk.bf16.gmra.mxu1 %vm630_vm2, %v599_v52  ;;  %v606_v35 = vpack.c.bf16 %v587_v32, %v586_v31  ;;  %v548_v36 = vadd.f32 %v547_v22, %v2635_v61  ;;  %v592_v46 = vmax.f32 %v556_v44, 0.0  ;;  %2233 = vmatprep.subr.bf16.mxu0 %v2392_v49 }
  0xfb   : > { %v487_v0 = vadd.f32 %v486_v62, %v2635_v61  ;;  %v577_v3 = vmax.f32 %v495_v58, 0.0  ;;  %v2190_v27 = vpop.f32.mrf.mxu1  ;;  %2234 = vmatpush3.bf16.msra.mxu0 %v2392_v49 }
  0xfc   : > { %v590_v41 = vmax.f32 %v548_v36, 0.0  ;;  %v559_v38 = vadd.f32 %v2190_v27, %v2635_v61 }
  0xfd   : > { %v575_v6 = vmax.f32 %v487_v0, 0.0  ;;  %v601_v14 = vpack.c.bf16 %v577_v3, %v576_v7  ;;  %v550_v33 = vpop.f32.mrf.mxu1 }
  0xfe   : > { %v551_v37 = vadd.f32 %v550_v33, %v2635_v61  ;;  %v593_v47 = vmax.f32 %v559_v38, 0.0  ;;  %v2393_v61 = vld [vmem:[%s2989_s4 + $0x8] sm:$0xff]  }
  0xff   : > { %v600_v8 = vpack.c.bf16 %v575_v6, %v574_v5  ;;  %2267 = vmatprep.subr.bf16.mxu1 %v2393_v61 }
 0x100   : > { %v591_v42 = vmax.f32 %v551_v37, 0.0  ;;  %v609_v48 = vpack.c.bf16 %v593_v47, %v592_v46  ;;  %2268 = vmatpush3.bf16.msra.mxu1 %v2393_v61 }
 0x101   : > { %2207 = vmatprep.mubr.msk.bf16.mxu1 %vm630_vm2, %v600_v8  ;;  %2269 = vmatprep.subr.bf16.mxu1 %v2394_v50 }
 0x102   : > { %2208 = vmatmul.mubr.msk.bf16.gmra.mxu1 %vm630_vm2, %v601_v14  ;;  %v608_v45 = vpack.c.bf16 %v591_v42, %v590_v41 }
 0x103   : > { %2211 = vmatprep.mubr.msk.bf16.mxu1 %vm630_vm2, %v602_v9 }
 0x104   : > { %2270 = vmatpush3.bf16.msra.mxu1 %v2394_v50 }
 0x10a   : > { %2212 = vmatmul.mubr.msk.bf16.gmra.mxu1 %vm630_vm2, %v603_v26 }
 0x10b   : > { %2215 = vmatprep.mubr.msk.bf16.mxu1 %vm630_vm2, %v604_v24 }
 0x112   : > { %2216 = vmatmul.mubr.msk.bf16.gmra.mxu1 %vm630_vm2, %v605_v34 }
 0x113   : > { %2219 = vmatprep.mubr.msk.bf16.mxu1 %vm630_vm2, %v606_v35 }
 0x11a   : > { %2220 = vmatmul.mubr.msk.bf16.gmra.mxu1 %vm630_vm2, %v607_v43 }
 0x11b   : > { %2223 = vmatprep.mubr.msk.bf16.mxu1 %vm630_vm2, %v608_v45 }
 0x122   : > { %2224 = vmatmul.mubr.msk.bf16.gmra.mxu1 %vm630_vm2, %v609_v48 }
 0x1aa   : > { %v2197_v52 = vpop.f32.mrf.mxu1 }
 0x1ab   : > { %v722_v62 = vadd.f32 %v2197_v52, %v2708_v53 }
 0x1ac   : > { %v713_v54 = vpop.f32.mrf.mxu1 }
 0x1ad   : > { %v714_v58 = vadd.f32 %v713_v54, %v2708_v53  ;;  %v842_v6 = vmax.f32 %v722_v62, 0.0 }
 0x1ae   : > { %v2198_v55 = vpop.f32.mrf.mxu1 }
 0x1af   : > { %v725_v60 = vadd.f32 %v2198_v55, %v2708_v53  ;;  %v840_v4 = vmax.f32 %v714_v58, 0.0 }
 0x1b0   : > { %v716_v63 = vpop.f32.mrf.mxu1 }
 0x1b1   : > { %v717_v0 = vadd.f32 %v716_v63, %v2708_v53  ;;  %v843_v1 = vmax.f32 %v725_v60, 0.0 }
 0x1b2   : > { %v2201_v3 = vpop.f32.mrf.mxu1 }
 0x1b3   : > { %v841_v5 = vmax.f32 %v717_v0, 0.0  ;;  %v873_v9 = vpack.c.bf16 %v843_v1, %v842_v6  ;;  %v738_v14 = vadd.f32 %v2201_v3, %v2708_v53 }
 0x1b4   : > { %v729_v7 = vpop.f32.mrf.mxu1 }
 0x1b5   : > { %v872_v8 = vpack.c.bf16 %v841_v5, %v840_v4  ;;  %v730_v12 = vadd.f32 %v729_v7, %v2708_v53  ;;  %v846_v22 = vmax.f32 %v738_v14, 0.0 }
 0x1b6   : > { %v2202_v10 = vpop.f32.mrf.mxu1 }
 0x1b7   : > { %v741_v13 = vadd.f32 %v2202_v10, %v2708_v53  ;;  %2235 = vmatprep.mubr.msk.bf16.mxu0 %vm924_vm3, %v872_v8  ;;  %v844_v19 = vmax.f32 %v730_v12, 0.0 }
 0x1b8   : > { %v732_v15 = vpop.f32.mrf.mxu1  ;;  %2236 = vmatmul.mubr.msk.bf16.vlgmr.msra.gmra.mxu0 %vm924_vm3, %v873_v9 }
 0x1b9   : > { %v733_v16 = vadd.f32 %v732_v15, %v2708_v53  ;;  %v847_v17 = vmax.f32 %v741_v13, 0.0 }
 0x1ba   : > { %v2205_v18 = vpop.f32.mrf.mxu1 }
 0x1bb   : > { %v845_v21 = vmax.f32 %v733_v16, 0.0  ;;  %v875_v24 = vpack.c.bf16 %v847_v17, %v846_v22  ;;  %v754_v27 = vadd.f32 %v2205_v18, %v2708_v53 }
 0x1bc   : > { %v745_v23 = vpop.f32.mrf.mxu1 }
 0x1bd   : > { %v874_v2 = vpack.c.bf16 %v845_v21, %v844_v19  ;;  %v746_v25 = vadd.f32 %v745_v23, %v2708_v53  ;;  %v850_v20 = vmax.f32 %v754_v27, 0.0 }
 0x1be   : > { %v2206_v11 = vpop.f32.mrf.mxu1 }
 0x1bf   : > { %v757_v26 = vadd.f32 %v2206_v11, %v2708_v53  ;;  %2239 = vmatprep.mubr.msk.bf16.mxu0 %vm924_vm3, %v874_v2  ;;  %v848_v33 = vmax.f32 %v746_v25, 0.0 }
 0x1c0   : > { %v748_v28 = vpop.f32.mrf.mxu1  ;;  %2240 = vmatmul.mubr.msk.bf16.gmra.mxu0 %vm924_vm3, %v875_v24 }
 0x1c1   : > { %v749_v30 = vadd.f32 %v748_v28, %v2708_v53  ;;  %v851_v31 = vmax.f32 %v757_v26, 0.0 }
 0x1c2   : > { %v2209_v32 = vpop.f32.mrf.mxu1 }
 0x1c3   : > { %v849_v34 = vmax.f32 %v749_v30, 0.0  ;;  %v877_v36 = vpack.c.bf16 %v851_v31, %v850_v20  ;;  %v770_v41 = vadd.f32 %v2209_v32, %v2708_v53 }
 0x1c4   : > { %v761_v29 = vpop.f32.mrf.mxu1 }
 0x1c5   : > { %v876_v35 = vpack.c.bf16 %v849_v34, %v848_v33  ;;  %v762_v39 = vadd.f32 %v761_v29, %v2708_v53  ;;  %v854_v47 = vmax.f32 %v770_v41, 0.0 }
 0x1c6   : > { %v2210_v37 = vpop.f32.mrf.mxu1 }
 0x1c7   : > { %v773_v40 = vadd.f32 %v2210_v37, %v2708_v53  ;;  %2243 = vmatprep.mubr.msk.bf16.mxu0 %vm924_vm3, %v876_v35  ;;  %v852_v45 = vmax.f32 %v762_v39, 0.0 }
 0x1c8   : > { %v764_v42 = vpop.f32.mrf.mxu1  ;;  %2244 = vmatmul.mubr.msk.bf16.gmra.mxu0 %vm924_vm3, %v877_v36 }
 0x1c9   : > { %v765_v43 = vadd.f32 %v764_v42, %v2708_v53  ;;  %v855_v44 = vmax.f32 %v773_v40, 0.0 }
 0x1ca   : > { %v2213_v38 = vpop.f32.mrf.mxu1 }
 0x1cb   : > { %v853_v46 = vmax.f32 %v765_v43, 0.0  ;;  %v879_v61 = vpack.c.bf16 %v855_v44, %v854_v47  ;;  %v786_v54 = vadd.f32 %v2213_v38, %v2708_v53 }
 0x1cc   : > { %v777_v48 = vpop.f32.mrf.mxu1 }
 0x1cd   : > { %v878_v49 = vpack.c.bf16 %v853_v46, %v852_v45  ;;  %v778_v51 = vadd.f32 %v777_v48, %v2708_v53  ;;  %v858_v1 = vmax.f32 %v786_v54, 0.0  ;;  %v2395_v45 = vld [vmem:[%s2990_s5] sm:$0xff]   ;;  %v898_v46 = vsub.s32 2, %v2626_v57 }
 0x1ce   : > { %v2214_v50 = vpop.f32.mrf.mxu1  ;;  %2303 = vmatprep.subr.bf16.mxu0 %v2395_v45 }
 0x1cf   : > { %v789_v52 = vadd.f32 %v2214_v50, %v2708_v53  ;;  %2247 = vmatprep.mubr.msk.bf16.mxu0 %vm924_vm3, %v878_v49  ;;  %v856_v63 = vmax.f32 %v778_v51, 0.0  ;;  %2304 = vmatpush3.bf16.msra.mxu0 %v2395_v45  ;;  %v2763_v48 = vrot.slane %v2632_v59, %v898_v46 }
 0x1d0   : > { %v780_v55 = vpop.f32.mrf.mxu1  ;;  %2248 = vmatmul.mubr.msk.bf16.gmra.mxu0 %vm924_vm3, %v879_v61 }
 0x1d1   : > { %v781_v58 = vadd.f32 %v780_v55, %v2708_v53  ;;  %v859_v60 = vmax.f32 %v789_v52, 0.0 }
 0x1d2   : > { %v2217_v62 = vpop.f32.mrf.mxu1 }
 0x1d3   : > { %v857_v0 = vmax.f32 %v781_v58, 0.0  ;;  %v881_v5 = vpack.c.bf16 %v859_v60, %v858_v1  ;;  %v802_v9 = vadd.f32 %v2217_v62, %v2708_v53 }
 0x1d4   : > { %v793_v3 = vpop.f32.mrf.mxu1 }
 0x1d5   : > { %v880_v4 = vpack.c.bf16 %v857_v0, %v856_v63  ;;  %v794_v7 = vadd.f32 %v793_v3, %v2708_v53  ;;  %v862_v17 = vmax.f32 %v802_v9, 0.0 }
 0x1d6   : > { %v2218_v6 = vpop.f32.mrf.mxu1 }
 0x1d7   : > { %v805_v8 = vadd.f32 %v2218_v6, %v2708_v53  ;;  %2251 = vmatprep.mubr.msk.bf16.mxu0 %vm924_vm3, %v880_v4  ;;  %v860_v15 = vmax.f32 %v794_v7, 0.0 }
 0x1d8   : > { %v796_v10 = vpop.f32.mrf.mxu1  ;;  %2252 = vmatmul.mubr.msk.bf16.gmra.mxu0 %vm924_vm3, %v881_v5 }
 0x1d9   : > { %v797_v12 = vadd.f32 %v796_v10, %v2708_v53  ;;  %v863_v13 = vmax.f32 %v805_v8, 0.0 }
 0x1da   : > { %v2221_v14 = vpop.f32.mrf.mxu1 }
 0x1db   : > { %v861_v16 = vmax.f32 %v797_v12, 0.0  ;;  %v818_v18 = vadd.f32 %v2221_v14, %v2708_v53  ;;  %v883_v23 = vpack.c.bf16 %v863_v13, %v862_v17 }
 0x1dc   : > { %v809_v19 = vpop.f32.mrf.mxu1 }
 0x1dd   : > { %v882_v21 = vpack.c.bf16 %v861_v16, %v860_v15  ;;  %v810_v22 = vadd.f32 %v809_v19, %v2708_v53  ;;  %v866_v11 = vmax.f32 %v818_v18, 0.0 }
 0x1de   : > { %v2222_v2 = vpop.f32.mrf.mxu1 }
 0x1df   : > { %v821_v24 = vadd.f32 %v2222_v2, %v2708_v53  ;;  %2255 = vmatprep.mubr.msk.bf16.mxu0 %vm924_vm3, %v882_v21  ;;  %v864_v26 = vmax.f32 %v810_v22, 0.0 }
 0x1e0   : > { %v812_v25 = vpop.f32.mrf.mxu1  ;;  %2256 = vmatmul.mubr.msk.bf16.gmra.mxu0 %vm924_vm3, %v883_v23 }
 0x1e1   : > { %v867_v27 = vmax.f32 %v821_v24, 0.0  ;;  %v813_v28 = vadd.f32 %v812_v25, %v2708_v53 }
 0x1e2   : > { %v2225_v30 = vpop.f32.mrf.mxu1 }
 0x1e3   : > { %v865_v31 = vmax.f32 %v813_v28, 0.0  ;;  %v885_v32 = vpack.c.bf16 %v867_v27, %v866_v11  ;;  %v834_v33 = vadd.f32 %v2225_v30, %v2708_v53 }
 0x1e4   : > { %v825_v34 = vpop.f32.mrf.mxu1 }
 0x1e5   : > { %v884_v20 = vpack.c.bf16 %v865_v31, %v864_v26  ;;  %v826_v29 = vadd.f32 %v825_v34, %v2708_v53  ;;  %v870_v37 = vmax.f32 %v834_v33, 0.0 }
 0x1e6   : > { %v2226_v35 = vpop.f32.mrf.mxu1 }
 0x1e7   : > { %v837_v36 = vadd.f32 %v2226_v35, %v2708_v53  ;;  %2259 = vmatprep.mubr.msk.bf16.mxu0 %vm924_vm3, %v884_v20  ;;  %v868_v40 = vmax.f32 %v826_v29, 0.0 }
 0x1e8   : > { %v828_v39 = vpop.f32.mrf.mxu1  ;;  %2260 = vmatmul.mubr.msk.bf16.gmra.mxu0 %vm924_vm3, %v885_v32 }
 0x1e9   : > { %v871_v41 = vmax.f32 %v837_v36, 0.0  ;;  %v829_v42 = vadd.f32 %v828_v39, %v2708_v53 }
 0x1eb   : > { %v869_v43 = vmax.f32 %v829_v42, 0.0  ;;  %v887_v44 = vpack.c.bf16 %v871_v41, %v870_v37 }
 0x1ed   : > { %v886_v38 = vpack.c.bf16 %v869_v43, %v868_v40 }
 0x1ef   : > { %2263 = vmatprep.mubr.msk.bf16.mxu0 %vm924_vm3, %v886_v38 }
 0x1f0   : > { %2264 = vmatmul.mubr.msk.bf16.gmra.mxu0 %vm924_vm3, %v887_v44 }
 0x278   : > { %v2237_v47 = vpop.f32.mrf.mxu0 }
 0x279   : > { %v1016_v51 = vadd.f32 %v2237_v47, %v2763_v48 }
 0x27a   : > { %v1007_v53 = vpop.f32.mrf.mxu0 }
 0x27b   : > { %v1008_v61 = vadd.f32 %v1007_v53, %v2763_v48  ;;  %v1136_v63 = vmax.f32 %v1016_v51, 0.0 }
 0x27c   : > { %v2238_v49 = vpop.f32.mrf.mxu0 }
 0x27d   : > { %v1019_v50 = vadd.f32 %v2238_v49, %v2763_v48  ;;  %v1134_v60 = vmax.f32 %v1008_v61, 0.0 }
 0x27e   : > { %v1010_v52 = vpop.f32.mrf.mxu0 }
 0x27f   : > { %v1011_v54 = vadd.f32 %v1010_v52, %v2763_v48  ;;  %v1137_v55 = vmax.f32 %v1019_v50, 0.0 }
 0x280   : > { %v2241_v58 = vpop.f32.mrf.mxu0 }
 0x281   : > { %v1135_v62 = vmax.f32 %v1011_v54, 0.0  ;;  %v1167_v3 = vpack.c.bf16 %v1137_v55, %v1136_v63  ;;  %v1032_v7 = vadd.f32 %v2241_v58, %v2763_v48 }
 0x282   : > { %v1023_v0 = vpop.f32.mrf.mxu0 }
 0x283   : > { %v1166_v1 = vpack.c.bf16 %v1135_v62, %v1134_v60  ;;  %v1024_v5 = vadd.f32 %v1023_v0, %v2763_v48  ;;  %v1140_v15 = vmax.f32 %v1032_v7, 0.0 }
 0x284   : > { %v2242_v4 = vpop.f32.mrf.mxu0 }
 0x285   : > { %v1035_v6 = vadd.f32 %v2242_v4, %v2763_v48  ;;  %2271 = vmatprep.mubr.msk.bf16.mxu1 %vm630_vm2, %v1166_v1  ;;  %v1138_v13 = vmax.f32 %v1024_v5, 0.0 }
 0x286   : > { %v1026_v8 = vpop.f32.mrf.mxu0  ;;  %2272 = vmatmul.mubr.msk.bf16.vlgmr.msra.gmra.mxu1 %vm630_vm2, %v1167_v3 }
 0x287   : > { %v1027_v9 = vadd.f32 %v1026_v8, %v2763_v48  ;;  %v1141_v10 = vmax.f32 %v1035_v6, 0.0 }
 0x288   : > { %v2245_v12 = vpop.f32.mrf.mxu0 }
 0x289   : > { %v1139_v14 = vmax.f32 %v1027_v9, 0.0  ;;  %v1169_v18 = vpack.c.bf16 %v1141_v10, %v1140_v15  ;;  %v1048_v23 = vadd.f32 %v2245_v12, %v2763_v48 }
 0x28a   : > { %v1039_v16 = vpop.f32.mrf.mxu0 }
 0x28b   : > { %v1168_v17 = vpack.c.bf16 %v1139_v14, %v1138_v13  ;;  %v1040_v21 = vadd.f32 %v1039_v16, %v2763_v48  ;;  %v1144_v28 = vmax.f32 %v1048_v23, 0.0 }
 0x28c   : > { %v2246_v19 = vpop.f32.mrf.mxu0 }
 0x28d   : > { %v1051_v22 = vadd.f32 %v2246_v19, %v2763_v48  ;;  %2275 = vmatprep.mubr.msk.bf16.mxu1 %vm630_vm2, %v1168_v17  ;;  %v1142_v26 = vmax.f32 %v1040_v21, 0.0 }
 0x28e   : > { %v1042_v2 = vpop.f32.mrf.mxu0  ;;  %2276 = vmatmul.mubr.msk.bf16.gmra.mxu1 %vm630_vm2, %v1169_v18 }
 0x28f   : > { %v1043_v24 = vadd.f32 %v1042_v2, %v2763_v48  ;;  %v1145_v11 = vmax.f32 %v1051_v22, 0.0 }
 0x290   : > { %v2249_v25 = vpop.f32.mrf.mxu0 }
 0x291   : > { %v1143_v27 = vmax.f32 %v1043_v24, 0.0  ;;  %v1171_v32 = vpack.c.bf16 %v1145_v11, %v1144_v28  ;;  %v1064_v29 = vadd.f32 %v2249_v25, %v2763_v48 }
 0x292   : > { %v1055_v30 = vpop.f32.mrf.mxu0 }
 0x293   : > { %v1170_v31 = vpack.c.bf16 %v1143_v27, %v1142_v26  ;;  %v1056_v34 = vadd.f32 %v1055_v30, %v2763_v48  ;;  %v1148_v42 = vmax.f32 %v1064_v29, 0.0 }
 0x294   : > { %v2250_v33 = vpop.f32.mrf.mxu0 }
 0x295   : > { %v1067_v20 = vadd.f32 %v2250_v33, %v2763_v48  ;;  %2279 = vmatprep.mubr.msk.bf16.mxu1 %vm630_vm2, %v1170_v31  ;;  %v1146_v40 = vmax.f32 %v1056_v34, 0.0 }
 0x296   : > { %v1058_v35 = vpop.f32.mrf.mxu0  ;;  %2280 = vmatmul.mubr.msk.bf16.gmra.mxu1 %vm630_vm2, %v1171_v32 }
 0x297   : > { %v1059_v36 = vadd.f32 %v1058_v35, %v2763_v48  ;;  %v1149_v37 = vmax.f32 %v1067_v20, 0.0 }
 0x298   : > { %v2253_v39 = vpop.f32.mrf.mxu0 }
 0x299   : > { %v1147_v41 = vmax.f32 %v1059_v36, 0.0  ;;  %v1173_v38 = vpack.c.bf16 %v1149_v37, %v1148_v42  ;;  %v1080_v53 = vadd.f32 %v2253_v39, %v2763_v48 }
 0x29a   : > { %v1071_v43 = vpop.f32.mrf.mxu0 }
 0x29b   : > { %v1172_v44 = vpack.c.bf16 %v1147_v41, %v1146_v40  ;;  %v1072_v46 = vadd.f32 %v1071_v43, %v2763_v48  ;;  %v1152_v55 = vmax.f32 %v1080_v53, 0.0  ;;  %v1188_v40 = vsub.s32 3, %v2626_v57 }
 0x29c   : > { %v2254_v45 = vpop.f32.mrf.mxu0 }
 0x29d   : > { %v1083_v47 = vadd.f32 %v2254_v45, %v2763_v48  ;;  %2283 = vmatprep.mubr.msk.bf16.mxu1 %vm630_vm2, %v1172_v44  ;;  %v1150_v52 = vmax.f32 %v1072_v46, 0.0  ;;  %v2815_v42 = vrot.slane %v2632_v59, %v1188_v40 }
 0x29e   : > { %v1074_v49 = vpop.f32.mrf.mxu0  ;;  %2284 = vmatmul.mubr.msk.bf16.gmra.mxu1 %vm630_vm2, %v1173_v38 }
 0x29f   : > { %v1075_v61 = vadd.f32 %v1074_v49, %v2763_v48  ;;  %v1153_v50 = vmax.f32 %v1083_v47, 0.0 }
 0x2a0   : > { %v2257_v51 = vpop.f32.mrf.mxu0 }
 0x2a1   : > { %v1151_v54 = vmax.f32 %v1075_v61, 0.0  ;;  %v1175_v62 = vpack.c.bf16 %v1153_v50, %v1152_v55  ;;  %v1096_v3 = vadd.f32 %v2257_v51, %v2763_v48 }
 0x2a2   : > { %v1087_v58 = vpop.f32.mrf.mxu0 }
 0x2a3   : > { %v1174_v60 = vpack.c.bf16 %v1151_v54, %v1150_v52  ;;  %v1088_v0 = vadd.f32 %v1087_v58, %v2763_v48  ;;  %v1156_v10 = vmax.f32 %v1096_v3, 0.0 }
 0x2a4   : > { %v2258_v63 = vpop.f32.mrf.mxu0 }
 0x2a5   : > { %v1099_v1 = vadd.f32 %v2258_v63, %v2763_v48  ;;  %2287 = vmatprep.mubr.msk.bf16.mxu1 %vm630_vm2, %v1174_v60  ;;  %v1154_v8 = vmax.f32 %v1088_v0, 0.0 }
 0x2a6   : > { %v1090_v4 = vpop.f32.mrf.mxu0  ;;  %2288 = vmatmul.mubr.msk.bf16.gmra.mxu1 %vm630_vm2, %v1175_v62 }
 0x2a7   : > { %v1091_v5 = vadd.f32 %v1090_v4, %v2763_v48  ;;  %v1157_v6 = vmax.f32 %v1099_v1, 0.0 }
 0x2a8   : > { %v2261_v7 = vpop.f32.mrf.mxu0 }
 0x2a9   : > { %v1155_v9 = vmax.f32 %v1091_v5, 0.0  ;;  %v1177_v14 = vpack.c.bf16 %v1157_v6, %v1156_v10  ;;  %v1112_v18 = vadd.f32 %v2261_v7, %v2763_v48 }
 0x2aa   : > { %v1103_v12 = vpop.f32.mrf.mxu0 }
 0x2ab   : > { %v1176_v13 = vpack.c.bf16 %v1155_v9, %v1154_v8  ;;  %v1104_v16 = vadd.f32 %v1103_v12, %v2763_v48  ;;  %v1160_v11 = vmax.f32 %v1112_v18, 0.0 }
 0x2ac   : > { %v2262_v15 = vpop.f32.mrf.mxu0 }
 0x2ad   : > { %v1115_v17 = vadd.f32 %v2262_v15, %v2763_v48  ;;  %2291 = vmatprep.mubr.msk.bf16.mxu1 %vm630_vm2, %v1176_v13  ;;  %v1158_v2 = vmax.f32 %v1104_v16, 0.0 }
 0x2ae   : > { %v1106_v19 = vpop.f32.mrf.mxu0  ;;  %2292 = vmatmul.mubr.msk.bf16.gmra.mxu1 %vm630_vm2, %v1177_v14 }
 0x2af   : > { %v1107_v21 = vadd.f32 %v1106_v19, %v2763_v48  ;;  %v1161_v22 = vmax.f32 %v1115_v17, 0.0 }
 0x2b0   : > { %v2265_v23 = vpop.f32.mrf.mxu0 }
 0x2b1   : > { %v1159_v24 = vmax.f32 %v1107_v21, 0.0  ;;  %v1128_v25 = vadd.f32 %v2265_v23, %v2763_v48  ;;  %v1179_v30 = vpack.c.bf16 %v1161_v22, %v1160_v11 }
 0x2b2   : > { %v1119_v26 = vpop.f32.mrf.mxu0 }
 0x2b3   : > { %v1178_v27 = vpack.c.bf16 %v1159_v24, %v1158_v2  ;;  %v1120_v28 = vadd.f32 %v1119_v26, %v2763_v48  ;;  %v1164_v33 = vmax.f32 %v1128_v25, 0.0 }
 0x2b4   : > { %v2266_v31 = vpop.f32.mrf.mxu0 }
 0x2b5   : > { %v1131_v32 = vadd.f32 %v2266_v31, %v2763_v48  ;;  %2295 = vmatprep.mubr.msk.bf16.mxu1 %vm630_vm2, %v1178_v27  ;;  %v1162_v20 = vmax.f32 %v1120_v28, 0.0 }
 0x2b6   : > { %v1122_v34 = vpop.f32.mrf.mxu0  ;;  %2296 = vmatmul.mubr.msk.bf16.gmra.mxu1 %vm630_vm2, %v1179_v30 }
 0x2b7   : > { %v1165_v29 = vmax.f32 %v1131_v32, 0.0  ;;  %v1123_v35 = vadd.f32 %v1122_v34, %v2763_v48 }
 0x2b9   : > { %v1163_v36 = vmax.f32 %v1123_v35, 0.0  ;;  %v1181_v37 = vpack.c.bf16 %v1165_v29, %v1164_v33 }
 0x2bb   : > { %v1180_v39 = vpack.c.bf16 %v1163_v36, %v1162_v20 }
 0x2bd   : > { %2299 = vmatprep.mubr.msk.bf16.mxu1 %vm630_vm2, %v1180_v39 }
 0x2be   : > { %2300 = vmatmul.mubr.msk.bf16.gmra.mxu1 %vm630_vm2, %v1181_v37 }
 0x346   : > { %v2273_v41 = vpop.f32.mrf.mxu1 }
 0x347   : > { %v1293_v48 = vadd.f32 %v2273_v41, %v2815_v42 }
 0x348   : > { %v1284_v43 = vpop.f32.mrf.mxu1 }
 0x349   : > { %v1285_v38 = vadd.f32 %v1284_v43, %v2815_v42  ;;  %v1413_v51 = vmax.f32 %v1293_v48, 0.0 }
 0x34a   : > { %v2274_v44 = vpop.f32.mrf.mxu1 }
 0x34b   : > { %v1296_v45 = vadd.f32 %v2274_v44, %v2815_v42  ;;  %v1411_v61 = vmax.f32 %v1285_v38, 0.0 }
 0x34c   : > { %v1287_v46 = vpop.f32.mrf.mxu1 }
 0x34d   : > { %v1288_v47 = vadd.f32 %v1287_v46, %v2815_v42  ;;  %v1414_v53 = vmax.f32 %v1296_v45, 0.0 }
 0x34e   : > { %v2277_v49 = vpop.f32.mrf.mxu1 }
 0x34f   : > { %v1412_v50 = vmax.f32 %v1288_v47, 0.0  ;;  %v1444_v54 = vpack.c.bf16 %v1414_v53, %v1413_v51  ;;  %v1309_v62 = vadd.f32 %v2277_v49, %v2815_v42 }
 0x350   : > { %v1300_v52 = vpop.f32.mrf.mxu1 }
 0x351   : > { %v1443_v59 = vpack.c.bf16 %v1412_v50, %v1411_v61  ;;  %v1301_v58 = vadd.f32 %v1300_v52, %v2815_v42  ;;  %v1417_v6 = vmax.f32 %v1309_v62, 0.0 }
 0x352   : > { %v2278_v55 = vpop.f32.mrf.mxu1 }
 0x353   : > { %v1312_v60 = vadd.f32 %v2278_v55, %v2815_v42  ;;  %2305 = vmatprep.mubr.msk.bf16.mxu0 %vm1471_vm4, %v1443_v59  ;;  %v1415_v4 = vmax.f32 %v1301_v58, 0.0 }
 0x354   : > { %v1303_v63 = vpop.f32.mrf.mxu1  ;;  %2306 = vmatmul.mubr.msk.bf16.vlgmr.msra.gmra.mxu0 %vm1471_vm4, %v1444_v54 }
 0x355   : > { %v1304_v0 = vadd.f32 %v1303_v63, %v2815_v42  ;;  %v1418_v1 = vmax.f32 %v1312_v60, 0.0 }
 0x356   : > { %v2281_v3 = vpop.f32.mrf.mxu1 }
 0x357   : > { %v1416_v5 = vmax.f32 %v1304_v0, 0.0  ;;  %v1446_v9 = vpack.c.bf16 %v1418_v1, %v1417_v6  ;;  %v1325_v14 = vadd.f32 %v2281_v3, %v2815_v42 }
 0x358   : > { %v1316_v7 = vpop.f32.mrf.mxu1 }
 0x359   : > { %v1445_v8 = vpack.c.bf16 %v1416_v5, %v1415_v4  ;;  %v1317_v12 = vadd.f32 %v1316_v7, %v2815_v42  ;;  %v1421_v22 = vmax.f32 %v1325_v14, 0.0 }
 0x35a   : > { %v2282_v10 = vpop.f32.mrf.mxu1 }
 0x35b   : > { %v1328_v13 = vadd.f32 %v2282_v10, %v2815_v42  ;;  %2309 = vmatprep.mubr.msk.bf16.mxu0 %vm1471_vm4, %v1445_v8  ;;  %v1419_v19 = vmax.f32 %v1317_v12, 0.0 }
 0x35c   : > { %v1319_v15 = vpop.f32.mrf.mxu1  ;;  %2310 = vmatmul.mubr.msk.bf16.gmra.mxu0 %vm1471_vm4, %v1446_v9 }
 0x35d   : > { %v1320_v16 = vadd.f32 %v1319_v15, %v2815_v42  ;;  %v1422_v17 = vmax.f32 %v1328_v13, 0.0 }
 0x35e   : > { %v2285_v18 = vpop.f32.mrf.mxu1 }
 0x35f   : > { %v1420_v21 = vmax.f32 %v1320_v16, 0.0  ;;  %v1448_v24 = vpack.c.bf16 %v1422_v17, %v1421_v22  ;;  %v1341_v27 = vadd.f32 %v2285_v18, %v2815_v42 }
 0x360   : > { %v1332_v23 = vpop.f32.mrf.mxu1 }
 0x361   : > { %v1447_v2 = vpack.c.bf16 %v1420_v21, %v1419_v19  ;;  %v1333_v25 = vadd.f32 %v1332_v23, %v2815_v42  ;;  %v1425_v20 = vmax.f32 %v1341_v27, 0.0 }
 0x362   : > { %v2286_v11 = vpop.f32.mrf.mxu1 }
 0x363   : > { %v1344_v26 = vadd.f32 %v2286_v11, %v2815_v42  ;;  %2313 = vmatprep.mubr.msk.bf16.mxu0 %vm1471_vm4, %v1447_v2  ;;  %v1423_v33 = vmax.f32 %v1333_v25, 0.0 }
 0x364   : > { %v1335_v28 = vpop.f32.mrf.mxu1  ;;  %2314 = vmatmul.mubr.msk.bf16.gmra.mxu0 %vm1471_vm4, %v1448_v24 }
 0x365   : > { %v1336_v30 = vadd.f32 %v1335_v28, %v2815_v42  ;;  %v1426_v31 = vmax.f32 %v1344_v26, 0.0 }
 0x366   : > { %v2289_v32 = vpop.f32.mrf.mxu1 }
 0x367   : > { %v1424_v34 = vmax.f32 %v1336_v30, 0.0  ;;  %v1450_v36 = vpack.c.bf16 %v1426_v31, %v1425_v20  ;;  %v1357_v41 = vadd.f32 %v2289_v32, %v2815_v42  ;;  %v1463_v32 = vsub.s32 4, %v2626_v57 }
 0x368   : > { %v1348_v29 = vpop.f32.mrf.mxu1  ;;  %v1715_v20 = vsub.s32 5, %v2626_v57 }
 0x369   : > { %v1449_v35 = vpack.c.bf16 %v1424_v34, %v1423_v33  ;;  %v1349_v39 = vadd.f32 %v1348_v29, %v2815_v42  ;;  %v1429_v47 = vmax.f32 %v1357_v41, 0.0  ;;  %v2869_v34 = vld [vmem:[%s2991_s6] sm:$0xff] }
 0x36a   : > { %v2290_v37 = vpop.f32.mrf.mxu1 }
 0x36b   : > { %v1360_v40 = vadd.f32 %v2290_v37, %v2815_v42  ;;  %2317 = vmatprep.mubr.msk.bf16.mxu0 %vm1471_vm4, %v1449_v35  ;;  %v1427_v48 = vmax.f32 %v1349_v39, 0.0  ;;  %v2877_v39 = vrot.slane %v2869_v34, %v1715_v20 }
 0x36c   : > { %v1351_v43 = vpop.f32.mrf.mxu1  ;;  %2318 = vmatmul.mubr.msk.bf16.gmra.mxu0 %vm1471_vm4, %v1450_v36 }
 0x36d   : > { %v1352_v44 = vadd.f32 %v1351_v43, %v2815_v42  ;;  %v1430_v38 = vmax.f32 %v1360_v40, 0.0 }
 0x36e   : > { %v2293_v45 = vpop.f32.mrf.mxu1 }
 0x36f   : > { %v1428_v46 = vmax.f32 %v1352_v44, 0.0  ;;  %v1452_v61 = vpack.c.bf16 %v1430_v38, %v1429_v47  ;;  %v1373_v59 = vadd.f32 %v2293_v45, %v2815_v42 }
 0x370   : > { %v1364_v53 = vpop.f32.mrf.mxu1 }
 0x371   : > { %v1451_v49 = vpack.c.bf16 %v1428_v46, %v1427_v48  ;;  %v1365_v51 = vadd.f32 %v1364_v53, %v2815_v42  ;;  %v1433_v0 = vmax.f32 %v1373_v59, 0.0 }
 0x372   : > { %v2294_v50 = vpop.f32.mrf.mxu1 }
 0x373   : > { %v1376_v52 = vadd.f32 %v2294_v50, %v2815_v42  ;;  %2321 = vmatprep.mubr.msk.bf16.mxu0 %vm1471_vm4, %v1451_v49  ;;  %v1431_v62 = vmax.f32 %v1365_v51, 0.0 }
 0x374   : > { %v1367_v54 = vpop.f32.mrf.mxu1  ;;  %2322 = vmatmul.mubr.msk.bf16.gmra.mxu0 %vm1471_vm4, %v1452_v61 }
 0x375   : > { %v1368_v55 = vadd.f32 %v1367_v54, %v2815_v42  ;;  %v1434_v58 = vmax.f32 %v1376_v52, 0.0 }
 0x376   : > { %v2297_v60 = vpop.f32.mrf.mxu1 }
 0x377   : > { %v1432_v63 = vmax.f32 %v1368_v55, 0.0  ;;  %v1454_v4 = vpack.c.bf16 %v1434_v58, %v1433_v0  ;;  %v1389_v8 = vadd.f32 %v2297_v60, %v2815_v42 }
 0x378   : > { %v1380_v1 = vpop.f32.mrf.mxu1 }
 0x379   : > { %v1453_v3 = vpack.c.bf16 %v1432_v63, %v1431_v62  ;;  %v1381_v6 = vadd.f32 %v1380_v1, %v2815_v42  ;;  %v1437_v16 = vmax.f32 %v1389_v8, 0.0 }
 0x37a   : > { %v2298_v5 = vpop.f32.mrf.mxu1 }
 0x37b   : > { %v1392_v7 = vadd.f32 %v2298_v5, %v2815_v42  ;;  %2325 = vmatprep.mubr.msk.bf16.mxu0 %vm1471_vm4, %v1453_v3  ;;  %v1435_v14 = vmax.f32 %v1381_v6, 0.0 }
 0x37c   : > { %v1383_v9 = vpop.f32.mrf.mxu1  ;;  %2326 = vmatmul.mubr.msk.bf16.gmra.mxu0 %vm1471_vm4, %v1454_v4 }
 0x37d   : > { %v1384_v10 = vadd.f32 %v1383_v9, %v2815_v42  ;;  %v1438_v12 = vmax.f32 %v1392_v7, 0.0 }
 0x37e   : > { %v2301_v13 = vpop.f32.mrf.mxu1 }
 0x37f   : > { %v1436_v15 = vmax.f32 %v1384_v10, 0.0  ;;  %v1456_v19 = vpack.c.bf16 %v1438_v12, %v1437_v16  ;;  %v1405_v21 = vadd.f32 %v2301_v13, %v2815_v42 }
 0x380   : > { %v1396_v17 = vpop.f32.mrf.mxu1 }
 0x381   : > { %v1455_v18 = vpack.c.bf16 %v1436_v15, %v1435_v14  ;;  %v1397_v23 = vadd.f32 %v1396_v17, %v2815_v42  ;;  %v1441_v25 = vmax.f32 %v1405_v21, 0.0 }
 0x382   : > { %v2302_v22 = vpop.f32.mrf.mxu1 }
 0x383   : > { %v1408_v2 = vadd.f32 %v2302_v22, %v2815_v42  ;;  %2329 = vmatprep.mubr.msk.bf16.mxu0 %vm1471_vm4, %v1455_v18  ;;  %v1439_v27 = vmax.f32 %v1397_v23, 0.0 }
 0x384   : > { %v1399_v24 = vpop.f32.mrf.mxu1  ;;  %2330 = vmatmul.mubr.msk.bf16.gmra.mxu0 %vm1471_vm4, %v1456_v19 }
 0x385   : > { %v1400_v11 = vadd.f32 %v1399_v24, %v2815_v42  ;;  %v1442_v26 = vmax.f32 %v1408_v2, 0.0  ;;  %v2872_v42 = vrot.slane %v2869_v34, %v1463_v32 }
 0x387   : > { %v1440_v28 = vmax.f32 %v1400_v11, 0.0  ;;  %v1458_v31 = vpack.c.bf16 %v1442_v26, %v1441_v25 }
 0x389   : > { %v1457_v30 = vpack.c.bf16 %v1440_v28, %v1439_v27 }
 0x38b   : > { %2333 = vmatprep.mubr.msk.bf16.mxu0 %vm1471_vm4, %v1457_v30 }
 0x38c   : > { %2334 = vmatmul.mubr.msk.bf16.gmra.mxu0 %vm1471_vm4, %v1458_v31 }
 0x414   : > { %v2307_v33 = vpop.f32.mrf.mxu0 }
 0x415   : > { %v1563_v41 = vadd.f32 %v2307_v33, %v2872_v42 }
 0x416   : > { %v1554_v29 = vpop.f32.mrf.mxu0 }
 0x417   : > { %v1555_v35 = vadd.f32 %v1554_v29, %v2872_v42  ;;  %v1683_v46 = vmax.f32 %v1563_v41, 0.0 }
 0x418   : > { %v2308_v36 = vpop.f32.mrf.mxu0 }
 0x419   : > { %v1681_v37 = vmax.f32 %v1555_v35, 0.0  ;;  %v1566_v47 = vadd.f32 %v2308_v36, %v2872_v42  ;;  %v1719_v52 = vmul.f32 %v2877_v39, %v1683_v46 }
 0x41a   : > { %v1557_v40 = vpop.f32.mrf.mxu0 }
 0x41b   : > { %v1558_v43 = vadd.f32 %v1557_v40, %v2872_v42  ;;  %v1717_v44 = vmul.f32 %v2877_v39, %v1681_v37  ;;  %v1684_v50 = vmax.f32 %v1566_v47, 0.0 }
 0x41c   : > { %v2311_v38 = vpop.f32.mrf.mxu0 }
 0x41d   : > { %v1682_v45 = vmax.f32 %v1558_v43, 0.0  ;;  %1749 = vxpose.xlu0.b32.start [1/16] %v1717_v44, 128  ;;  %v1720_v60 = vmul.f32 %v2877_v39, %v1684_v50  ;;  %v1579_v0 = vadd.f32 %v2311_v38, %v2872_v42 }
 0x41e   : > { %v1570_v48 = vpop.f32.mrf.mxu0 }
 0x41f   : > { %v1718_v53 = vmul.f32 %v2877_v39, %v1682_v45  ;;  %v1571_v51 = vadd.f32 %v1570_v48, %v2872_v42  ;;  %v1687_v6 = vmax.f32 %v1579_v0, 0.0 }
 0x420   : > { %v2312_v49 = vpop.f32.mrf.mxu0 }
 0x421   : > { %1750 = vxpose.xlu0.b32.cont [2/16] %v1718_v53, 128  ;;  %v1685_v55 = vmax.f32 %v1571_v51, 0.0  ;;  %v1582_v7 = vadd.f32 %v2312_v49, %v2872_v42  ;;  %v1723_v14 = vmul.f32 %v2877_v39, %v1687_v6 }
 0x422   : > { %v1573_v61 = vpop.f32.mrf.mxu0 }
 0x423   : > { %v1574_v58 = vadd.f32 %v1573_v61, %v2872_v42  ;;  %v1721_v3 = vmul.f32 %v2877_v39, %v1685_v55  ;;  %v1688_v13 = vmax.f32 %v1582_v7, 0.0 }
 0x424   : > { %v2315_v59 = vpop.f32.mrf.mxu0 }
 0x425   : > { %1751 = vxpose.xlu0.b32.cont [3/16] %v1719_v52, 128  ;;  %v1686_v1 = vmax.f32 %v1574_v58, 0.0  ;;  %v1724_v21 = vmul.f32 %v2877_v39, %v1688_v13  ;;  %v1595_v2 = vadd.f32 %v2315_v59, %v2872_v42 }
 0x426   : > { %v1586_v54 = vpop.f32.mrf.mxu0 }
 0x427   : > { %v1722_v8 = vmul.f32 %v2877_v39, %v1686_v1  ;;  %v1587_v10 = vadd.f32 %v1586_v54, %v2872_v42  ;;  %v1691_v32 = vmax.f32 %v1595_v2, 0.0 }
 0x428   : > { %v2316_v62 = vpop.f32.mrf.mxu0 }
 0x429   : > { %1752 = vxpose.xlu0.b32.cont [4/16] %v1720_v60, 128  ;;  %v1689_v16 = vmax.f32 %v1587_v10, 0.0  ;;  %v1598_v33 = vadd.f32 %v2316_v62, %v2872_v42  ;;  %v1727_v46 = vmul.f32 %v2877_v39, %v1691_v32 }
 0x42a   : > { %v1589_v63 = vpop.f32.mrf.mxu0 }
 0x42b   : > { %v1590_v18 = vadd.f32 %v1589_v63, %v2872_v42  ;;  %v1725_v11 = vmul.f32 %v2877_v39, %v1689_v16  ;;  %v1692_v41 = vmax.f32 %v1598_v33, 0.0 }
 0x42c   : > { %v2890_v4 = vpop.f32.mrf.mxu0 }
 0x42d   : > { %1753 = vxpose.xlu0.b32.cont [5/16] %v1721_v3, 128  ;;  %v1690_v25 = vmax.f32 %v1590_v18, 0.0  ;;  %v1728_v52 = vmul.f32 %v2877_v39, %v1692_v41  ;;  %v1611_v62 = vadd.f32 %v2890_v4, %v2872_v42 }
 0x42e   : > { %v1602_v5 = vpop.f32.mrf.mxu0 }
 0x42f   : > { %v1726_v37 = vmul.f32 %v2877_v39, %v1690_v25  ;;  %v1603_v43 = vadd.f32 %v1602_v5, %v2872_v42 }
 0x430   : > { %v2894_v9 = vpop.f32.mrf.mxu0 }
 0x431   : > { %1754 = vxpose.xlu0.b32.cont [6/16] %v1722_v8, 128  ;;  %v1693_v49 = vmax.f32 %v1603_v43, 0.0 }
 0x432   : > { %v1605_v12 = vpop.f32.mrf.mxu0 }
 0x433   : > { %v1606_v61 = vadd.f32 %v1605_v12, %v2872_v42  ;;  %v1729_v8 = vmul.f32 %v2877_v39, %v1693_v49 }
 0x434   : > { %v2323_v15 = vpop.f32.mrf.mxu0 }
 0x435   : > { %1755 = vxpose.xlu0.b32.cont [7/16] %v1723_v14, 128  ;;  %v1627_v26 = vadd.f32 %v2323_v15, %v2872_v42  ;;  %v1694_v3 = vmax.f32 %v1606_v61, 0.0  ;;  %v1695_v15 = vmax.f32 %v1611_v62, 0.0 }
 0x436   : > { %v1618_v17 = vpop.f32.mrf.mxu0 }
 0x437   : > { %v1619_v19 = vadd.f32 %v1618_v17, %v2872_v42  ;;  %v1699_v29 = vmax.f32 %v1627_v26, 0.0  ;;  %v1730_v2 = vmul.f32 %v2877_v39, %v1694_v3 }
 0x438   : > { %v2324_v22 = vpop.f32.mrf.mxu0 }
 0x439   : > { %v1697_v23 = vmax.f32 %v1619_v19, 0.0  ;;  %1756 = vxpose.xlu0.b32.cont [8/16] %v1724_v21, 128  ;;  %v1630_v35 = vadd.f32 %v2324_v22, %v2872_v42  ;;  %v1735_v48 = vmul.f32 %v2877_v39, %v1699_v29  ;;  %v1614_v19 = vadd.f32 %v2894_v9, %v2872_v42 }
 0x43a   : > { %v1621_v24 = vpop.f32.mrf.mxu0 }
 0x43b   : > { %v1622_v27 = vadd.f32 %v1621_v24, %v2872_v42  ;;  %v1733_v28 = vmul.f32 %v2877_v39, %v1697_v23  ;;  %v1700_v45 = vmax.f32 %v1630_v35, 0.0 }
 0x43c   : > { %v2327_v30 = vpop.f32.mrf.mxu0 }
 0x43d   : > { %v1698_v31 = vmax.f32 %v1622_v27, 0.0  ;;  %1781 = vxpose.xlu1.b32.start [1/16] %v1733_v28, 128  ;;  %1757 = vxpose.xlu0.b32.cont [9/16] %v1725_v11, 128  ;;  %v1736_v58 = vmul.f32 %v2877_v39, %v1700_v45  ;;  %v1643_v5 = vadd.f32 %v2327_v30, %v2872_v42 }
 0x43e   : > { %v1634_v20 = vpop.f32.mrf.mxu0 }
 0x43f   : > { %v1734_v36 = vmul.f32 %v2877_v39, %v1698_v31  ;;  %v1635_v44 = vadd.f32 %v1634_v20, %v2872_v42  ;;  %v1703_v21 = vmax.f32 %v1643_v5, 0.0  ;;  %v1696_v31 = vmax.f32 %v1614_v19, 0.0 }
 0x440   : > { %v2328_v40 = vpop.f32.mrf.mxu0  ;;  %v1731_v20 = vmul.f32 %v2877_v39, %v1695_v15 }
 0x441   : > { %1782 = vxpose.xlu1.b32.cont [2/16] %v1734_v36, 128  ;;  %1758 = vxpose.xlu0.b32.cont [10/16] %v1726_v37, 128  ;;  %v1701_v50 = vmax.f32 %v1635_v44, 0.0  ;;  %v1646_v22 = vadd.f32 %v2328_v40, %v2872_v42  ;;  %v1739_v33 = vmul.f32 %v2877_v39, %v1703_v21  ;;  %v1732_v44 = vmul.f32 %v2877_v39, %v1696_v31 }
 0x442   : > { %v1637_v38 = vpop.f32.mrf.mxu0 }
 0x443   : > { %v1638_v59 = vadd.f32 %v1637_v38, %v2872_v42  ;;  %v1737_v7 = vmul.f32 %v2877_v39, %v1701_v50  ;;  %v1704_v29 = vmax.f32 %v1646_v22, 0.0 }
 0x444   : > { %v2331_v47 = vpop.f32.mrf.mxu0 }
 0x445   : > { %v1659_v53 = vadd.f32 %v2331_v47, %v2872_v42  ;;  %1783 = vxpose.xlu1.b32.cont [3/16] %v1735_v48, 128  ;;  %1759 = vxpose.xlu0.b32.cont [11/16] %v1727_v46, 128  ;;  %v1702_v10 = vmax.f32 %v1638_v59, 0.0  ;;  %v1740_v43 = vmul.f32 %v2877_v39, %v1704_v29 }
 0x446   : > { %v1650_v51 = vpop.f32.mrf.mxu0 }
 0x447   : > { %v1707_v54 = vmax.f32 %v1659_v53, 0.0  ;;  %v1651_v55 = vadd.f32 %v1650_v51, %v2872_v42  ;;  %v1738_v25 = vmul.f32 %v2877_v39, %v1702_v10 }
 0x448   : > { %v2332_v60 = vpop.f32.mrf.mxu0 }
 0x449   : > { %v1705_v63 = vmax.f32 %v1651_v55, 0.0  ;;  %v1662_v0 = vadd.f32 %v2332_v60, %v2872_v42  ;;  %1784 = vxpose.xlu1.b32.cont [4/16] %v1736_v58, 128  ;;  %1760 = vxpose.xlu0.b32.cont [12/16] %v1728_v52, 128  ;;  %v1743_v1 = vmul.f32 %v2877_v39, %v1707_v54 }
 0x44a   : > { %v1653_v6 = vpop.f32.mrf.mxu0 }
 0x44b   : > { %v1708_v12 = vmax.f32 %v1662_v0, 0.0  ;;  %v1654_v13 = vadd.f32 %v1653_v6, %v2872_v42  ;;  %v1741_v4 = vmul.f32 %v2877_v39, %v1705_v63 }
 0x44c   : > { %v2335_v14 = vpop.f32.mrf.mxu0 }
 0x44d   : > { %v1706_v16 = vmax.f32 %v1654_v13, 0.0  ;;  %v1675_v17 = vadd.f32 %v2335_v14, %v2872_v42  ;;  %1785 = vxpose.xlu1.b32.cont [5/16] %v1737_v7, 128  ;;  %1761 = vxpose.xlu0.b32.cont [13/16] %v1729_v8, 128  ;;  %v1744_v18 = vmul.f32 %v2877_v39, %v1708_v12 }
 0x44e   : > { %v1666_v23 = vpop.f32.mrf.mxu0 }
 0x44f   : > { %v1711_v24 = vmax.f32 %v1675_v17, 0.0  ;;  %v1667_v11 = vadd.f32 %v1666_v23, %v2872_v42  ;;  %v1742_v26 = vmul.f32 %v2877_v39, %v1706_v16 }
 0x450   : > { %v2336_v27 = vpop.f32.mrf.mxu0 }
 0x451   : > { %v1709_v28 = vmax.f32 %v1667_v11, 0.0  ;;  %v1678_v30 = vadd.f32 %v2336_v27, %v2872_v42  ;;  %1786 = vxpose.xlu1.b32.cont [6/16] %v1738_v25, 128  ;;  %1762 = vxpose.xlu0.b32.cont [14/16] %v1730_v2, 128  ;;  %v1747_v9 = vmul.f32 %v2877_v39, %v1711_v24 }
 0x452   : > { %v1669_v32 = vpop.f32.mrf.mxu0 }
 0x453   : > { %v1712_v35 = vmax.f32 %v1678_v30, 0.0  ;;  %v1670_v36 = vadd.f32 %v1669_v32, %v2872_v42  ;;  %v1745_v37 = vmul.f32 %v2877_v39, %v1709_v28  ;;  %v2459_v42 = vmov 0  }
 0x455   : > { %v1710_v40 = vmax.f32 %v1670_v36, 0.0  ;;  %1787 = vxpose.xlu1.b32.cont [7/16] %v1739_v33, 128  ;;  %1763 = vxpose.xlu0.b32.cont [15/16] %v1731_v20, 128  ;;  %v1748_v41 = vmul.f32 %v2877_v39, %v1712_v35 }
 0x457   : > { %v1746_v38 = vmul.f32 %v2877_v39, %v1710_v40 }
 0x459   : > { %1788 = vxpose.xlu1.b32.cont [8/16] %v1740_v43, 128  ;;  %1764 = vxpose.xlu0.b32.end [16/16] %v1732_v44, 128 }
 0x45d   : > { %1789 = vxpose.xlu1.b32.cont [9/16] %v1741_v4, 128 }
 0x461   : > { %1790 = vxpose.xlu1.b32.cont [10/16] %v1742_v26, 128 }
 0x465   : > { %1791 = vxpose.xlu1.b32.cont [11/16] %v1743_v1, 128 }
 0x469   : > { %1792 = vxpose.xlu1.b32.cont [12/16] %v1744_v18, 128 }
 0x46d   : > { %1793 = vxpose.xlu1.b32.cont [13/16] %v1745_v37, 128 }
 0x471   : > { %1794 = vxpose.xlu1.b32.cont [14/16] %v1746_v38, 128 }
 0x475   : > { %1795 = vxpose.xlu1.b32.cont [15/16] %v1747_v9, 128 }
 0x479   : > { %1796 = vxpose.xlu1.b32.end [16/16] %v1748_v41, 128 }
 0x482   : > { %2384 = vset.pattern.permute.xlu0 %v2459_v42 }
 0x483   : > { %1857 = vperm.xlu0 %2384, %v2869_v34  }
 0x499   : > { %v1765_v45 = vpop.trf.xlu0 }
 0x49d   : > { %v1766_v48 = vpop.trf.xlu0 }
 0x49e   : > { %v1813_v61 = vadd.f32 %v1766_v48, %v1765_v45 }
 0x4a1   : > { %v1767_v46 = vpop.trf.xlu0 }
 0x4a2   : > { %v1814_v50 = vadd.f32 %v1813_v61, %v1767_v46  ;;  %v2460_v61 = vmov 1966171168  }
 0x4a5   : > { %v1768_v47 = vpop.trf.xlu0 }
 0x4a6   : > { %v1815_v59 = vadd.f32 %v1814_v50, %v1768_v47  ;;  %v1866_v50 = vunpack.c.l.s4 %v2460_v61 }
 0x4a9   : > { %v1769_v53 = vpop.trf.xlu0 }
 0x4aa   : > { %v1816_v58 = vadd.f32 %v1815_v59, %v1769_v53 }
 0x4ad   : > { %v1770_v39 = vpop.trf.xlu0 }
 0x4ae   : > { %v1817_v62 = vadd.f32 %v1816_v58, %v1770_v39 }
 0x4b1   : > { %v1771_v49 = vpop.trf.xlu0 }
 0x4b2   : > { %v1818_v34 = vadd.f32 %v1817_v62, %v1771_v49 }
 0x4b5   : > { %v1772_v51 = vpop.trf.xlu0 }
 0x4b6   : > { %v1819_v5 = vadd.f32 %v1818_v34, %v1772_v51 }
 0x4b9   : > { %v1797_v52 = vpop.trf.xlu1  ;;  %v1773_v54 = vpop.trf.xlu0 }
 0x4ba   : > { %v1820_v7 = vadd.f32 %v1819_v5, %v1773_v54  ;;  %v1867_v54 = vunpack.c.0.s8 %v1866_v50 }
 0x4bc   : > { %v1870_v62 = vsub.s32 %v1867_v54, %v2626_v57 }
 0x4bd   : > { %v1798_v55 = vpop.trf.xlu1  ;;  %v1774_v63 = vpop.trf.xlu0 }
 0x4be   : > { %v1821_v12 = vadd.f32 %v1820_v7, %v1774_v63  ;;  %v1834_v16 = vadd.f32 %v1798_v55, %v1797_v52 }
 0x4c1   : > { %v1799_v60 = vpop.trf.xlu1  ;;  %v1775_v1 = vpop.trf.xlu0 }
 0x4c2   : > { %v1822_v14 = vadd.f32 %v1821_v12, %v1775_v1  ;;  %v1835_v19 = vadd.f32 %v1834_v16, %v1799_v60 }
 0x4c5   : > { %v1800_v0 = vpop.trf.xlu1  ;;  %v1776_v8 = vpop.trf.xlu0 }
 0x4c6   : > { %v1823_v17 = vadd.f32 %v1822_v14, %v1776_v8  ;;  %v1836_v22 = vadd.f32 %v1835_v19, %v1800_v0 }
 0x4c9   : > { %v1801_v3 = vpop.trf.xlu1  ;;  %v1777_v13 = vpop.trf.xlu0 }
 0x4ca   : > { %v1824_v23 = vadd.f32 %v1823_v17, %v1777_v13  ;;  %v1837_v2 = vadd.f32 %v1836_v22, %v1801_v3 }
 0x4cd   : > { %v1802_v6 = vpop.trf.xlu1  ;;  %v1778_v18 = vpop.trf.xlu0 }
 0x4ce   : > { %v1838_v25 = vadd.f32 %v1837_v2, %v1802_v6  ;;  %v1825_v26 = vadd.f32 %v1824_v23, %v1778_v18 }
 0x4d1   : > { %v1803_v10 = vpop.trf.xlu1  ;;  %v1779_v24 = vpop.trf.xlu0 }
 0x4d2   : > { %v1839_v27 = vadd.f32 %v1838_v25, %v1803_v10  ;;  %v1826_v30 = vadd.f32 %v1825_v26, %v1779_v24 }
 0x4d5   : > { %v1804_v4 = vpop.trf.xlu1  ;;  %v1780_v31 = vpop.trf.xlu0 }
 0x4d6   : > { %v1840_v9 = vadd.f32 %v1839_v27, %v1804_v4  ;;  %v1827_v20 = vadd.f32 %v1826_v30, %v1780_v31 }
 0x4d8   : > { %v1828_v37 = vrot.slane %v1827_v20, 4 }
 0x4d9   : > { %v1805_v15 = vpop.trf.xlu1 }
 0x4da   : > { %v1841_v32 = vadd.f32 %v1840_v9, %v1805_v15  ;;  %v1829_v44 = vadd.f32 %v1828_v37, %v1827_v20 }
 0x4dc   : > { %v1830_v48 = vrot.slane %v1829_v44, 2 }
 0x4dd   : > { %v1806_v21 = vpop.trf.xlu1 }
 0x4de   : > { %v1842_v29 = vadd.f32 %v1841_v32, %v1806_v21  ;;  %v1831_v39 = vadd.f32 %v1830_v48, %v1829_v44 }
 0x4e0   : > { %v1832_v51 = vrot.slane %v1831_v39, 1 }
 0x4e1   : > { %v1807_v11 = vpop.trf.xlu1 }
 0x4e2   : > { %v1843_v35 = vadd.f32 %v1842_v29, %v1807_v11  ;;  %v1833_v58 = vadd.f32 %v1832_v51, %v1831_v39 }
 0x4e5   : > { %v1808_v28 = vpop.trf.xlu1 }
 0x4e6   : > { %v1844_v40 = vadd.f32 %v1843_v35, %v1808_v28 }
 0x4e9   : > { %v1809_v33 = vpop.trf.xlu1 }
 0x4ea   : > { %v1845_v41 = vadd.f32 %v1844_v40, %v1809_v33 }
 0x4ed   : > { %v1810_v36 = vpop.trf.xlu1 }
 0x4ee   : > { %v1846_v38 = vadd.f32 %v1845_v41, %v1810_v36 }
 0x4f1   : > { %v1811_v43 = vpop.trf.xlu1 }
 0x4f2   : > { %v1847_v42 = vadd.f32 %v1846_v38, %v1811_v43 }
 0x4f5   : > { %v1812_v45 = vpop.trf.xlu1 }
 0x4f6   : > { %v1848_v46 = vadd.f32 %v1847_v42, %v1812_v45 }
 0x4f8   : > { %v1849_v47 = vrot.slane %v1848_v46, 4 }
 0x4fa   : > { %v1850_v53 = vadd.f32 %v1849_v47, %v1848_v46 }
 0x4fc   : > { %v1851_v49 = vrot.slane %v1850_v53, 2 }
 0x4fe   : > { %v1852_v52 = vadd.f32 %v1851_v49, %v1850_v53  ;;  %v1858_v55 = vpop.permute.xlu0 %1857 }
 0x4ff   : > { %v1860_v63 = vadd.f32 %v1858_v55, %v1833_v58 }
 0x500   : > { %v1853_v59 = vrot.slane %v1852_v52, 1 }
 0x502   : > { %v1854_v60 = vadd.f32 %v1853_v59, %v1852_v52 }
 0x504   : > { %v1861_v0 = vadd.f32 %v1858_v55, %v1854_v60 }
 0x506   : > { %v1864_v34 = vcombine.high %v1860_v63, %v1861_v0 }
 0x508   : > { %v1871_v1 = vrot.slane %v1864_v34, %v1870_v62 }
 0x50a   : > { %v1878_v3 = vrot.slane %v1871_v1, %v1870_v62 }
 0x50c   : > { %v1879_v5 = vcombine.high %v1878_v3, %v1878_v3 }
 0x50e   : > { %1885 = vst.msk [vmem:[%s272_s19] sm:$0x3] %vm1883_vm5, %v1879_v5 }
 0x50f   : > { %2410 = shalt.err (!%p2407_p3)
}
 0x510   : > { %s2411_s14 = scalar_lea.hbm %s1899_s23, 32  ;;  %s2415_s16 = scalar_lea.hbm %s2992_s7, 64 }
 0x511   : > { %p2412_p4 = scmp.ne.s32.totalorder %s1899_s23, %s2411_s14  ;;  %p2416_p9 = scmp.lt.s32.totalorder %s1899_s23, %s2992_s7 }
 0x512   : > { %p2417_p10 = scmp.lt.s32.totalorder %s2415_s16, %s2411_s14 }
 0x513   : > { %p2413_p7 = pnand %p2412_p4, %p2537_p5 }
 0x514   : > { %p2418_p11 = por %p2417_p10, %p2416_p9 }
 0x515   : > { %p2414_p8 = pneg %p2413_p7 }
 0x517   : > { %p2419_p12 = pnand %p2418_p11, %p2414_p8 }
 0x519   : > { %2422 = shalt.err (!%p2419_p12)
}
 0x51a   : > { %2343 = dma.vmem_to_hbm [thread:$0]  (%p2537_p5), %s1902_s20, 32, %s1899_s23, %s1887_s28  }
 0x51b PF: > { %p2349_p13 = scmp.ge.s32.totalorder %s2457_s27, 2  ;;  %s1913_s21 = sand.u32 1, %s2445_s24  }
 0x51c   : > { %s1914_s22 = scalar_lea.sflag [#allocation3], %s1913_s21 }
 0x51d   : > { %p2346_p0 = pnand %p2349_p13, %p2541_p6 }
 0x51f   : > { %p2347_p1 = pneg %p2346_p0 }
 0x521   : > { %2440 = dma.done.wait (%p2347_p1), %s1914_s22, 32  }
 0x522   : > { %2442 = vsyncadd (%p2347_p1), %s1914_s22, 4294967264  ;;  %p17_p2 = scmp.ge.s32.totalorder %s2525_s30, 4   ;;  %s2995_s24 = smov %s2449_s25 }
 0x523   : > { %s2996_s25 = smov %s2453_s26  ;;  %s2997_s26 = smov %s2535_s10 }
 0x524   : > { %s2998_s27 = smov %s2525_s30  ;;  %19 = sbr.rel (!%p17_p2) target bundleno = 3 (0x3), region = 83 }
 0x529   :  { %1919 = vsyncpa [#allocation3], 1 }
 0x52a   :  { %1921 = vsyncpa [#allocation3 + $0x1], 1 }

</bundles_post_ra>
